<compile_context>
chip_gen: v7x
topology: tpu7x:2x2x1
jax: 0.10.0
libtpu: 0.0.40
codegen_flags: <defaults>
</compile_context>

<pallas_src>
import random

import jax
import jax.numpy as jnp
import numpy as np
from jax import lax
from jax.experimental import pallas as pl
from jax.experimental.pallas import tpu as pltpu


# ------------------------------------------------------------------ kernel --
def make_seq2seq_kernel(tf_flags):
    """Build a kernel specialized on the (static) teacher-forcing flag tuple."""
    tf_flags = tuple(int(f) for f in tf_flags)

    def kernel(inputs_ref,                        # VMEM (S, B, 1)
               targets_ref,                       # VMEM (T, B, 1)
               w_ih_e_ref, w_hh_e_ref, b_e_ref,   # encoder: (1,4H), (H,4H), (1,4H)  (g-scaled)
               w_ih_d_ref, w_hh_d_ext_ref, b_d_ref,  # decoder: (1,4H), (H,4H+128), (1,4H)
               w_lin_ref, b_lin_ref,              # linear:  (1,H),  (1,1)
               out_ref):                          # VMEM (B, T)
        S, B, _ = inputs_ref.shape
        T = targets_ref.shape[0]
        H = w_hh_e_ref.shape[0]

        # ---- hoist all weight / bias / input loads out of the recurrences ----
        w_ih_e = w_ih_e_ref[...]          # (1, 4H)   g lanes pre-scaled by 2
        w_hh_e = w_hh_e_ref[...]          # (H, 4H)
        b_e = b_e_ref[...]                # (1, 4H)
        w_ih_d = w_ih_d_ref[...]          # (1, 4H)
        w_hh_d_ext = w_hh_d_ext_ref[...]  # (H, 4H+128); cols 0:4H = g-scaled w_hh_d,
                                          #              col 4H = w_lin^T, rest zero
        b_d = b_d_ref[...]                # (1, 4H)
        w_lin = w_lin_ref[...]            # (1, H)  (unscaled; final-step head only)
        b_lin = b_lin_ref[...]            # (1, 1)

        inputs = inputs_ref[...]          # (S, B, 1)
        targets = targets_ref[...]        # (T, B, 1)

        # ---- hoisted iota masks (built once, closed over by activate) -------
        lane4 = lax.broadcasted_iota(jnp.int32, (B, 4 * H), 1)
        is_g = (lane4 >= 2 * H) & (lane4 < 3 * H)
        lane_t = lax.broadcasted_iota(jnp.int32, (B, T), 1)

        def activate(gates):
            # gates: (B, 4H), PyTorch order [i | f | g | o], g lanes pre-scaled
            # by 2.  Single sigmoid pass; tanh(x) = 2*sigmoid(2x) - 1 on g lanes.
            s = jax.nn.sigmoid(gates)
            act = jnp.where(is_g, 2.0 * s - 1.0, s)
            return (act[:, 0:H], act[:, H:2 * H],
                    act[:, 2 * H:3 * H], act[:, 3 * H:4 * H])

        # ---- encoder --------------------------------------------------------
        # I == 1: input projection for ALL S steps with one VPU broadcast
        # multiply (off the serial chain).
        gx_enc = inputs * w_ih_e + b_e                   # (S, B, 4H)

        h = jnp.zeros((B, H), jnp.float32)
        c = jnp.zeros((B, H), jnp.float32)

        for t in range(S):                               # fully unrolled, static
            gates = gx_enc[t] + jnp.dot(h, w_hh_e,
                                        preferred_element_type=jnp.float32)
            i_g, f_g, g_g, o_g = activate(gates)
            c = f_g * c + i_g * g_g
            h = o_g * jnp.tanh(c)

        # ---- decoder --------------------------------------------------------
        # Input projections that don't depend on the recurrence, off-chain:
        gx_first = inputs[S - 1] * w_ih_d + b_d          # (B, 4H)   first step
        gx_tgt = targets * w_ih_d + b_d                  # (T, B, 4H) forced steps

        out_acc = jnp.zeros((B, T), jnp.float32)

        for t in range(T):                               # fully unrolled, static
            # One MXU matmul gives both the recurrent gate contribution
            # (lanes 0:4H) and out_{t-1} = h_t @ w_lin (lane 4H).
            gmm = jnp.dot(h, w_hh_d_ext, preferred_element_type=jnp.float32)
            if t == 0:
                gx = gx_first
            else:
                prev_out = gmm[:, 4 * H:4 * H + 1] + b_lin       # out_{t-1}, (B,1)
                out_acc = jnp.where(lane_t == (t - 1), prev_out, out_acc)
                if tf_flags[t - 1]:
                    gx = gx_tgt[t - 1]          # teacher forced: fully off-chain
                else:
                    gx = prev_out * w_ih_d + b_d
            gates = gx + gmm[:, 0:4 * H]
            i_g, f_g, g_g, o_g = activate(gates)
            c = f_g * c + i_g * g_g
            h = o_g * jnp.tanh(c)

        # Final output out_{T-1} = h_T @ w_lin^T + b_lin (off-chain, after loop).
        final_out = jnp.sum(h * w_lin, axis=-1, keepdims=True) + b_lin   # (B,1)
        out_acc = jnp.where(lane_t == (T - 1), final_out, out_acc)

        # single lane-dense store after the loop
        out_ref[...] = out_acc

    return kernel


# ----------------------------------------------------------------- wrapper --
def seq2seq_forward(inputs, targets, params, tf_flags, target_len):
    """inputs: (B, S, I), targets: (B, T, I) batch-first (PyTorch convention)."""
    B, S, I = inputs.shape
    H = params["w_hh_e"].shape[1]
    T = target_len
    # The PyTorch module only shape-checks when input_size == 1 (the decoder
    # feeds its own scalar output back as the next input).
    assert I == 1, "seq2seq requires input_size == 1"

    inputs_t = jnp.transpose(inputs, (1, 0, 2)).astype(jnp.float32)    # (S, B, 1)
    targets_t = jnp.transpose(targets, (1, 0, 2)).astype(jnp.float32)  # (T, B, 1)

    # Scale the g-gate columns (2H:3H) by 2 once, off-chain, so the kernel can
    # use a single sigmoid pass (tanh(x) = 2*sigmoid(2x) - 1).
    g_scale = jnp.concatenate([jnp.ones((2 * H,), jnp.float32),
                               jnp.full((H,), 2.0, jnp.float32),
                               jnp.ones((H,), jnp.float32)])[None, :]   # (1, 4H)

    # Pre-transpose weights so the kernel computes x @ W directly.
    w_ih_e = params["w_ih_e"].T.astype(jnp.float32) * g_scale                      # (1, 4H)
    w_hh_e = params["w_hh_e"].T.astype(jnp.float32) * g_scale                      # (H, 4H)
    b_e = (params["b_ih_e"] + params["b_hh_e"])[None, :].astype(jnp.float32) * g_scale
    w_ih_d = params["w_ih_d"].T.astype(jnp.float32) * g_scale
    w_hh_d = params["w_hh_d"].T.astype(jnp.float32) * g_scale
    b_d = (params["b_ih_d"] + params["b_hh_d"])[None, :].astype(jnp.float32) * g_scale
    w_lin = params["w_lin"].astype(jnp.float32)                                   # (1, H)
    b_lin = params["b_lin"][None, :].astype(jnp.float32)                           # (1, 1)

    # Fused decoder weight: [ g-scaled w_hh_d | w_lin^T | zeros ] -> (H, 4H+128).
    # Column 4H is lane-aligned; on v6e/v7x (256-wide MXU N) this stays a
    # single MXU pass per step.
    PAD = 128
    w_hh_d_ext = jnp.concatenate(
        [w_hh_d, w_lin.T.astype(jnp.float32),
         jnp.zeros((H, PAD - 1), jnp.float32)], axis=1)                 # (H, 4H+128)

    kernel = make_seq2seq_kernel(np.asarray(tf_flags).astype(np.int32).tolist())

    out = pl.pallas_call(
        kernel,
        out_shape=jax.ShapeDtypeStruct((B, T), jnp.float32),
        in_specs=[pl.BlockSpec(memory_space=pltpu.MemorySpace.VMEM)] * 10,
        out_specs=pl.BlockSpec(memory_space=pltpu.MemorySpace.VMEM),
    )(inputs_t, targets_t,
      w_ih_e, w_hh_e, b_e, w_ih_d, w_hh_d_ext, b_d, w_lin, b_lin)

    return out[:, :, None]                                             # (B, T, 1)


# --------------------------------------------------------- pure-JAX reference
def seq2seq_reference(inputs, targets, params, tf_flags, target_len):
    B, S, I = inputs.shape
    H = params["w_hh_e"].shape[1]

    def cell(x, h, c, w_ih, w_hh, b_ih, b_hh):
        gates = x @ w_ih.T + b_ih + h @ w_hh.T + b_hh
        i, f, g, o = jnp.split(gates, 4, axis=-1)
        c_new = jax.nn.sigmoid(f) * c + jax.nn.sigmoid(i) * jnp.tanh(g)
        h_new = jax.nn.sigmoid(o) * jnp.tanh(c_new)
        return h_new, c_new

    h = jnp.zeros((B, H), jnp.float32)
    c = jnp.zeros((B, H), jnp.float32)
    for t in range(S):
        h, c = cell(inputs[:, t, :], h, c,
                    params["w_ih_e"], params["w_hh_e"],
                    params["b_ih_e"], params["b_hh_e"])
    dec_in = inputs[:, -1, :]
    outs = []
    for t in range(target_len):
        h, c = cell(dec_in, h, c,
                    params["w_ih_d"], params["w_hh_d"],
                    params["b_ih_d"], params["b_hh_d"])
        out = h @ params["w_lin"].T + params["b_lin"]
        outs.append(out)
        dec_in = targets[:, t, :] if int(tf_flags[t]) > 0 else out
    return jnp.stack(outs, axis=1)                  # (B, T, 1)


# -------------------------------------------------------------------- main --
if __name__ == "__main__":
    # input_size must be 1 (decoder feeds its scalar output back as next input)
    B, S, I, H, T = 2, 8, 1, 32, 6
    teacher_forcing_ratio = 0.5

    key = jax.random.PRNGKey(0)
    ks = jax.random.split(key, 16)
    bound = 1.0 / np.sqrt(H)

    def u(k, shape):
        return jax.random.uniform(k, shape, jnp.float32, -bound, bound)

    params = {
        "w_ih_e": u(ks[0], (4 * H, I)), "w_hh_e": u(ks[1], (4 * H, H)),
        "b_ih_e": u(ks[2], (4 * H,)),   "b_hh_e": u(ks[3], (4 * H,)),
        "w_ih_d": u(ks[4], (4 * H, I)), "w_hh_d": u(ks[5], (4 * H, H)),
        "b_ih_d": u(ks[6], (4 * H,)),   "b_hh_d": u(ks[7], (4 * H,)),
        "w_lin":  u(ks[8], (1, H)),     "b_lin":  u(ks[9], (1,)),
    }

    inputs = jax.random.normal(ks[10], (B, S, I), jnp.float32)
    targets = jax.random.normal(ks[11], (B, T, I), jnp.float32)

    # Per-step teacher-forcing coin flips, drawn deterministically on host
    # (mirrors `random.random() < teacher_forcing_ratio` inside the loop).
    random.seed(0)
    tf_flags = np.array(
        [1 if random.random() < teacher_forcing_ratio else 0 for _ in range(T)],
        dtype=np.int32)

    out = seq2seq_forward(inputs, targets, params, tf_flags, T)
    out = jax.block_until_ready(out)

    ref = seq2seq_reference(inputs, targets, params, tf_flags, T)
    np.testing.assert_allclose(np.asarray(out), np.asarray(ref),
                               rtol=1e-4, atol=5e-5)
    assert out.shape == (B, T, 1)
    print("KERNEL_OK")
</pallas_src>

<mosaic_0001>
module attributes {stable_mosaic.version = 11 : i64} {
  func.func @kernel(%arg0: memref<8x2x1xf32, #tpu.memory_space<vmem>>, %arg1: memref<6x2x1xf32, #tpu.memory_space<vmem>>, %arg2: memref<1x128xf32, #tpu.memory_space<vmem>>, %arg3: memref<32x128xf32, #tpu.memory_space<vmem>>, %arg4: memref<1x128xf32, #tpu.memory_space<vmem>>, %arg5: memref<1x128xf32, #tpu.memory_space<vmem>>, %arg6: memref<32x256xf32, #tpu.memory_space<vmem>>, %arg7: memref<1x128xf32, #tpu.memory_space<vmem>>, %arg8: memref<1x32xf32, #tpu.memory_space<vmem>>, %arg9: memref<1x1xf32, #tpu.memory_space<vmem>>, %arg10: memref<2x6xf32, #tpu.memory_space<vmem>>) attributes {dimension_semantics = [], scalar_prefetch = 0 : i64, scratch_operands = 0 : i64, tpu.core_type = #tpu.core_type<tc>} {
    %c0 = arith.constant 0 : index
    %c0_0 = arith.constant 0 : index
    %0 = vector.load %arg2[%c0, %c0_0] : memref<1x128xf32, #tpu.memory_space<vmem>>, vector<1x128xf32>
    %c0_1 = arith.constant 0 : index
    %c0_2 = arith.constant 0 : index
    %1 = vector.load %arg3[%c0_1, %c0_2] : memref<32x128xf32, #tpu.memory_space<vmem>>, vector<32x128xf32>
    %c0_3 = arith.constant 0 : index
    %c0_4 = arith.constant 0 : index
    %2 = vector.load %arg4[%c0_3, %c0_4] : memref<1x128xf32, #tpu.memory_space<vmem>>, vector<1x128xf32>
    %c0_5 = arith.constant 0 : index
    %c0_6 = arith.constant 0 : index
    %3 = vector.load %arg5[%c0_5, %c0_6] : memref<1x128xf32, #tpu.memory_space<vmem>>, vector<1x128xf32>
    %c0_7 = arith.constant 0 : index
    %c0_8 = arith.constant 0 : index
    %4 = vector.load %arg6[%c0_7, %c0_8] : memref<32x256xf32, #tpu.memory_space<vmem>>, vector<32x256xf32>
    %c0_9 = arith.constant 0 : index
    %c0_10 = arith.constant 0 : index
    %5 = vector.load %arg7[%c0_9, %c0_10] : memref<1x128xf32, #tpu.memory_space<vmem>>, vector<1x128xf32>
    %c0_11 = arith.constant 0 : index
    %c0_12 = arith.constant 0 : index
    %6 = vector.load %arg8[%c0_11, %c0_12] : memref<1x32xf32, #tpu.memory_space<vmem>>, vector<1x32xf32>
    %c0_13 = arith.constant 0 : index
    %c0_14 = arith.constant 0 : index
    %7 = vector.load %arg9[%c0_13, %c0_14] : memref<1x1xf32, #tpu.memory_space<vmem>>, vector<1x1xf32>
    %c0_15 = arith.constant 0 : index
    %c0_16 = arith.constant 0 : index
    %c0_17 = arith.constant 0 : index
    %8 = vector.load %arg0[%c0_15, %c0_16, %c0_17] : memref<8x2x1xf32, #tpu.memory_space<vmem>>, vector<8x2x1xf32>
    %c0_18 = arith.constant 0 : index
    %c0_19 = arith.constant 0 : index
    %c0_20 = arith.constant 0 : index
    %9 = vector.load %arg1[%c0_18, %c0_19, %c0_20] : memref<6x2x1xf32, #tpu.memory_space<vmem>>, vector<6x2x1xf32>
    %10 = tpu.iota {dimensions = array<i32: 1>} : vector<2x128xi32>
    %c64_i32 = arith.constant 64 : i32
    %11 = vector.broadcast %c64_i32 : i32 to vector<2x128xi32>
    %12 = arith.cmpi sge, %10, %11 : vector<2x128xi32>
    %c96_i32 = arith.constant 96 : i32
    %13 = vector.broadcast %c96_i32 : i32 to vector<2x128xi32>
    %14 = arith.cmpi slt, %10, %13 : vector<2x128xi32>
    %15 = arith.andi %12, %14 : vector<2x128xi1>
    %16 = tpu.iota {dimensions = array<i32: 1>} : vector<2x6xi32>
    %17 = vector.shape_cast %0 : vector<1x128xf32> to vector<1x1x128xf32>
    %18 = vector.broadcast %8 : vector<8x2x1xf32> to vector<8x2x128xf32>
    %19 = vector.broadcast %17 : vector<1x1x128xf32> to vector<8x2x128xf32>
    %20 = arith.mulf %18, %19 : vector<8x2x128xf32>
    %21 = vector.shape_cast %2 : vector<1x128xf32> to vector<1x1x128xf32>
    %22 = vector.broadcast %21 : vector<1x1x128xf32> to vector<8x2x128xf32>
    %23 = arith.addf %20, %22 : vector<8x2x128xf32>
    %cst = arith.constant 0.000000e+00 : f32
    %24 = vector.broadcast %cst : f32 to vector<2x32xf32>
    %cst_21 = arith.constant 0.000000e+00 : f32
    %25 = vector.broadcast %cst_21 : f32 to vector<2x32xf32>
    %26 = vector.extract_strided_slice %23 {offsets = [0, 0, 0], sizes = [1, 2, 128], strides = [1, 1, 1]} : vector<8x2x128xf32> to vector<1x2x128xf32>
    %27 = vector.shape_cast %26 : vector<1x2x128xf32> to vector<2x128xf32>
    %cst_22 = arith.constant dense<0.000000e+00> : vector<2x128xf32>
    %28 = tpu.matmul %24, %1, %cst_22 {dimension_numbers = #tpu.dot_dimension_numbers<[1], [0], [0], [1], [0, 0, 1, 1], [], []>} : vector<2x32xf32>, vector<32x128xf32>, vector<2x128xf32> -> vector<2x128xf32>
    %29 = arith.addf %27, %28 : vector<2x128xf32>
    %30 = arith.negf %29 : vector<2x128xf32>
    %31 = math.exp %30 : vector<2x128xf32>
    %cst_23 = arith.constant 1.000000e+00 : f32
    %32 = vector.broadcast %cst_23 : f32 to vector<2x128xf32>
    %33 = arith.addf %32, %31 : vector<2x128xf32>
    %34 = arith.divf %32, %33 : vector<2x128xf32>
    %cst_24 = arith.constant 2.000000e+00 : f32
    %35 = vector.broadcast %cst_24 : f32 to vector<2x128xf32>
    %36 = arith.mulf %35, %34 : vector<2x128xf32>
    %cst_25 = arith.constant 1.000000e+00 : f32
    %37 = vector.broadcast %cst_25 : f32 to vector<2x128xf32>
    %38 = arith.subf %36, %37 : vector<2x128xf32>
    %39 = arith.select %15, %38, %34 : vector<2x128xi1>, vector<2x128xf32>
    %40 = vector.extract_strided_slice %39 {offsets = [0, 0], sizes = [2, 32], strides = [1, 1]} : vector<2x128xf32> to vector<2x32xf32>
    %41 = vector.extract_strided_slice %39 {offsets = [0, 32], sizes = [2, 32], strides = [1, 1]} : vector<2x128xf32> to vector<2x32xf32>
    %42 = vector.extract_strided_slice %39 {offsets = [0, 64], sizes = [2, 32], strides = [1, 1]} : vector<2x128xf32> to vector<2x32xf32>
    %43 = vector.extract_strided_slice %39 {offsets = [0, 96], sizes = [2, 32], strides = [1, 1]} : vector<2x128xf32> to vector<2x32xf32>
    %44 = arith.mulf %41, %25 : vector<2x32xf32>
    %45 = arith.mulf %40, %42 : vector<2x32xf32>
    %46 = arith.addf %44, %45 : vector<2x32xf32>
    %47 = math.tanh %46 : vector<2x32xf32>
    %48 = arith.mulf %43, %47 : vector<2x32xf32>
    %49 = vector.extract_strided_slice %23 {offsets = [1, 0, 0], sizes = [1, 2, 128], strides = [1, 1, 1]} : vector<8x2x128xf32> to vector<1x2x128xf32>
    %50 = vector.shape_cast %49 : vector<1x2x128xf32> to vector<2x128xf32>
    %cst_26 = arith.constant dense<0.000000e+00> : vector<2x128xf32>
    %51 = tpu.matmul %48, %1, %cst_26 {dimension_numbers = #tpu.dot_dimension_numbers<[1], [0], [0], [1], [0, 0, 1, 1], [], []>} : vector<2x32xf32>, vector<32x128xf32>, vector<2x128xf32> -> vector<2x128xf32>
    %52 = arith.addf %50, %51 : vector<2x128xf32>
    %53 = arith.negf %52 : vector<2x128xf32>
    %54 = math.exp %53 : vector<2x128xf32>
    %cst_27 = arith.constant 1.000000e+00 : f32
    %55 = vector.broadcast %cst_27 : f32 to vector<2x128xf32>
    %56 = arith.addf %55, %54 : vector<2x128xf32>
    %57 = arith.divf %55, %56 : vector<2x128xf32>
    %cst_28 = arith.constant 2.000000e+00 : f32
    %58 = vector.broadcast %cst_28 : f32 to vector<2x128xf32>
    %59 = arith.mulf %58, %57 : vector<2x128xf32>
    %cst_29 = arith.constant 1.000000e+00 : f32
    %60 = vector.broadcast %cst_29 : f32 to vector<2x128xf32>
    %61 = arith.subf %59, %60 : vector<2x128xf32>
    %62 = arith.select %15, %61, %57 : vector<2x128xi1>, vector<2x128xf32>
    %63 = vector.extract_strided_slice %62 {offsets = [0, 0], sizes = [2, 32], strides = [1, 1]} : vector<2x128xf32> to vector<2x32xf32>
    %64 = vector.extract_strided_slice %62 {offsets = [0, 32], sizes = [2, 32], strides = [1, 1]} : vector<2x128xf32> to vector<2x32xf32>
    %65 = vector.extract_strided_slice %62 {offsets = [0, 64], sizes = [2, 32], strides = [1, 1]} : vector<2x128xf32> to vector<2x32xf32>
    %66 = vector.extract_strided_slice %62 {offsets = [0, 96], sizes = [2, 32], strides = [1, 1]} : vector<2x128xf32> to vector<2x32xf32>
    %67 = arith.mulf %64, %46 : vector<2x32xf32>
    %68 = arith.mulf %63, %65 : vector<2x32xf32>
    %69 = arith.addf %67, %68 : vector<2x32xf32>
    %70 = math.tanh %69 : vector<2x32xf32>
    %71 = arith.mulf %66, %70 : vector<2x32xf32>
    %72 = vector.extract_strided_slice %23 {offsets = [2, 0, 0], sizes = [1, 2, 128], strides = [1, 1, 1]} : vector<8x2x128xf32> to vector<1x2x128xf32>
    %73 = vector.shape_cast %72 : vector<1x2x128xf32> to vector<2x128xf32>
    %cst_30 = arith.constant dense<0.000000e+00> : vector<2x128xf32>
    %74 = tpu.matmul %71, %1, %cst_30 {dimension_numbers = #tpu.dot_dimension_numbers<[1], [0], [0], [1], [0, 0, 1, 1], [], []>} : vector<2x32xf32>, vector<32x128xf32>, vector<2x128xf32> -> vector<2x128xf32>
    %75 = arith.addf %73, %74 : vector<2x128xf32>
    %76 = arith.negf %75 : vector<2x128xf32>
    %77 = math.exp %76 : vector<2x128xf32>
    %cst_31 = arith.constant 1.000000e+00 : f32
    %78 = vector.broadcast %cst_31 : f32 to vector<2x128xf32>
    %79 = arith.addf %78, %77 : vector<2x128xf32>
    %80 = arith.divf %78, %79 : vector<2x128xf32>
    %cst_32 = arith.constant 2.000000e+00 : f32
    %81 = vector.broadcast %cst_32 : f32 to vector<2x128xf32>
    %82 = arith.mulf %81, %80 : vector<2x128xf32>
    %cst_33 = arith.constant 1.000000e+00 : f32
    %83 = vector.broadcast %cst_33 : f32 to vector<2x128xf32>
    %84 = arith.subf %82, %83 : vector<2x128xf32>
    %85 = arith.select %15, %84, %80 : vector<2x128xi1>, vector<2x128xf32>
    %86 = vector.extract_strided_slice %85 {offsets = [0, 0], sizes = [2, 32], strides = [1, 1]} : vector<2x128xf32> to vector<2x32xf32>
    %87 = vector.extract_strided_slice %85 {offsets = [0, 32], sizes = [2, 32], strides = [1, 1]} : vector<2x128xf32> to vector<2x32xf32>
    %88 = vector.extract_strided_slice %85 {offsets = [0, 64], sizes = [2, 32], strides = [1, 1]} : vector<2x128xf32> to vector<2x32xf32>
    %89 = vector.extract_strided_slice %85 {offsets = [0, 96], sizes = [2, 32], strides = [1, 1]} : vector<2x128xf32> to vector<2x32xf32>
    %90 = arith.mulf %87, %69 : vector<2x32xf32>
    %91 = arith.mulf %86, %88 : vector<2x32xf32>
    %92 = arith.addf %90, %91 : vector<2x32xf32>
    %93 = math.tanh %92 : vector<2x32xf32>
    %94 = arith.mulf %89, %93 : vector<2x32xf32>
    %95 = vector.extract_strided_slice %23 {offsets = [3, 0, 0], sizes = [1, 2, 128], strides = [1, 1, 1]} : vector<8x2x128xf32> to vector<1x2x128xf32>
    %96 = vector.shape_cast %95 : vector<1x2x128xf32> to vector<2x128xf32>
    %cst_34 = arith.constant dense<0.000000e+00> : vector<2x128xf32>
    %97 = tpu.matmul %94, %1, %cst_34 {dimension_numbers = #tpu.dot_dimension_numbers<[1], [0], [0], [1], [0, 0, 1, 1], [], []>} : vector<2x32xf32>, vector<32x128xf32>, vector<2x128xf32> -> vector<2x128xf32>
    %98 = arith.addf %96, %97 : vector<2x128xf32>
    %99 = arith.negf %98 : vector<2x128xf32>
    %100 = math.exp %99 : vector<2x128xf32>
    %cst_35 = arith.constant 1.000000e+00 : f32
    %101 = vector.broadcast %cst_35 : f32 to vector<2x128xf32>
    %102 = arith.addf %101, %100 : vector<2x128xf32>
    %103 = arith.divf %101, %102 : vector<2x128xf32>
    %cst_36 = arith.constant 2.000000e+00 : f32
    %104 = vector.broadcast %cst_36 : f32 to vector<2x128xf32>
    %105 = arith.mulf %104, %103 : vector<2x128xf32>
    %cst_37 = arith.constant 1.000000e+00 : f32
    %106 = vector.broadcast %cst_37 : f32 to vector<2x128xf32>
    %107 = arith.subf %105, %106 : vector<2x128xf32>
    %108 = arith.select %15, %107, %103 : vector<2x128xi1>, vector<2x128xf32>
    %109 = vector.extract_strided_slice %108 {offsets = [0, 0], sizes = [2, 32], strides = [1, 1]} : vector<2x128xf32> to vector<2x32xf32>
    %110 = vector.extract_strided_slice %108 {offsets = [0, 32], sizes = [2, 32], strides = [1, 1]} : vector<2x128xf32> to vector<2x32xf32>
    %111 = vector.extract_strided_slice %108 {offsets = [0, 64], sizes = [2, 32], strides = [1, 1]} : vector<2x128xf32> to vector<2x32xf32>
    %112 = vector.extract_strided_slice %108 {offsets = [0, 96], sizes = [2, 32], strides = [1, 1]} : vector<2x128xf32> to vector<2x32xf32>
    %113 = arith.mulf %110, %92 : vector<2x32xf32>
    %114 = arith.mulf %109, %111 : vector<2x32xf32>
    %115 = arith.addf %113, %114 : vector<2x32xf32>
    %116 = math.tanh %115 : vector<2x32xf32>
    %117 = arith.mulf %112, %116 : vector<2x32xf32>
    %118 = vector.extract_strided_slice %23 {offsets = [4, 0, 0], sizes = [1, 2, 128], strides = [1, 1, 1]} : vector<8x2x128xf32> to vector<1x2x128xf32>
    %119 = vector.shape_cast %118 : vector<1x2x128xf32> to vector<2x128xf32>
    %cst_38 = arith.constant dense<0.000000e+00> : vector<2x128xf32>
    %120 = tpu.matmul %117, %1, %cst_38 {dimension_numbers = #tpu.dot_dimension_numbers<[1], [0], [0], [1], [0, 0, 1, 1], [], []>} : vector<2x32xf32>, vector<32x128xf32>, vector<2x128xf32> -> vector<2x128xf32>
    %121 = arith.addf %119, %120 : vector<2x128xf32>
    %122 = arith.negf %121 : vector<2x128xf32>
    %123 = math.exp %122 : vector<2x128xf32>
    %cst_39 = arith.constant 1.000000e+00 : f32
    %124 = vector.broadcast %cst_39 : f32 to vector<2x128xf32>
    %125 = arith.addf %124, %123 : vector<2x128xf32>
    %126 = arith.divf %124, %125 : vector<2x128xf32>
    %cst_40 = arith.constant 2.000000e+00 : f32
    %127 = vector.broadcast %cst_40 : f32 to vector<2x128xf32>
    %128 = arith.mulf %127, %126 : vector<2x128xf32>
    %cst_41 = arith.constant 1.000000e+00 : f32
    %129 = vector.broadcast %cst_41 : f32 to vector<2x128xf32>
    %130 = arith.subf %128, %129 : vector<2x128xf32>
    %131 = arith.select %15, %130, %126 : vector<2x128xi1>, vector<2x128xf32>
    %132 = vector.extract_strided_slice %131 {offsets = [0, 0], sizes = [2, 32], strides = [1, 1]} : vector<2x128xf32> to vector<2x32xf32>
    %133 = vector.extract_strided_slice %131 {offsets = [0, 32], sizes = [2, 32], strides = [1, 1]} : vector<2x128xf32> to vector<2x32xf32>
    %134 = vector.extract_strided_slice %131 {offsets = [0, 64], sizes = [2, 32], strides = [1, 1]} : vector<2x128xf32> to vector<2x32xf32>
    %135 = vector.extract_strided_slice %131 {offsets = [0, 96], sizes = [2, 32], strides = [1, 1]} : vector<2x128xf32> to vector<2x32xf32>
    %136 = arith.mulf %133, %115 : vector<2x32xf32>
    %137 = arith.mulf %132, %134 : vector<2x32xf32>
    %138 = arith.addf %136, %137 : vector<2x32xf32>
    %139 = math.tanh %138 : vector<2x32xf32>
    %140 = arith.mulf %135, %139 : vector<2x32xf32>
    %141 = vector.extract_strided_slice %23 {offsets = [5, 0, 0], sizes = [1, 2, 128], strides = [1, 1, 1]} : vector<8x2x128xf32> to vector<1x2x128xf32>
    %142 = vector.shape_cast %141 : vector<1x2x128xf32> to vector<2x128xf32>
    %cst_42 = arith.constant dense<0.000000e+00> : vector<2x128xf32>
    %143 = tpu.matmul %140, %1, %cst_42 {dimension_numbers = #tpu.dot_dimension_numbers<[1], [0], [0], [1], [0, 0, 1, 1], [], []>} : vector<2x32xf32>, vector<32x128xf32>, vector<2x128xf32> -> vector<2x128xf32>
    %144 = arith.addf %142, %143 : vector<2x128xf32>
    %145 = arith.negf %144 : vector<2x128xf32>
    %146 = math.exp %145 : vector<2x128xf32>
    %cst_43 = arith.constant 1.000000e+00 : f32
    %147 = vector.broadcast %cst_43 : f32 to vector<2x128xf32>
    %148 = arith.addf %147, %146 : vector<2x128xf32>
    %149 = arith.divf %147, %148 : vector<2x128xf32>
    %cst_44 = arith.constant 2.000000e+00 : f32
    %150 = vector.broadcast %cst_44 : f32 to vector<2x128xf32>
    %151 = arith.mulf %150, %149 : vector<2x128xf32>
    %cst_45 = arith.constant 1.000000e+00 : f32
    %152 = vector.broadcast %cst_45 : f32 to vector<2x128xf32>
    %153 = arith.subf %151, %152 : vector<2x128xf32>
    %154 = arith.select %15, %153, %149 : vector<2x128xi1>, vector<2x128xf32>
    %155 = vector.extract_strided_slice %154 {offsets = [0, 0], sizes = [2, 32], strides = [1, 1]} : vector<2x128xf32> to vector<2x32xf32>
    %156 = vector.extract_strided_slice %154 {offsets = [0, 32], sizes = [2, 32], strides = [1, 1]} : vector<2x128xf32> to vector<2x32xf32>
    %157 = vector.extract_strided_slice %154 {offsets = [0, 64], sizes = [2, 32], strides = [1, 1]} : vector<2x128xf32> to vector<2x32xf32>
    %158 = vector.extract_strided_slice %154 {offsets = [0, 96], sizes = [2, 32], strides = [1, 1]} : vector<2x128xf32> to vector<2x32xf32>
    %159 = arith.mulf %156, %138 : vector<2x32xf32>
    %160 = arith.mulf %155, %157 : vector<2x32xf32>
    %161 = arith.addf %159, %160 : vector<2x32xf32>
    %162 = math.tanh %161 : vector<2x32xf32>
    %163 = arith.mulf %158, %162 : vector<2x32xf32>
    %164 = vector.extract_strided_slice %23 {offsets = [6, 0, 0], sizes = [1, 2, 128], strides = [1, 1, 1]} : vector<8x2x128xf32> to vector<1x2x128xf32>
    %165 = vector.shape_cast %164 : vector<1x2x128xf32> to vector<2x128xf32>
    %cst_46 = arith.constant dense<0.000000e+00> : vector<2x128xf32>
    %166 = tpu.matmul %163, %1, %cst_46 {dimension_numbers = #tpu.dot_dimension_numbers<[1], [0], [0], [1], [0, 0, 1, 1], [], []>} : vector<2x32xf32>, vector<32x128xf32>, vector<2x128xf32> -> vector<2x128xf32>
    %167 = arith.addf %165, %166 : vector<2x128xf32>
    %168 = arith.negf %167 : vector<2x128xf32>
    %169 = math.exp %168 : vector<2x128xf32>
    %cst_47 = arith.constant 1.000000e+00 : f32
    %170 = vector.broadcast %cst_47 : f32 to vector<2x128xf32>
    %171 = arith.addf %170, %169 : vector<2x128xf32>
    %172 = arith.divf %170, %171 : vector<2x128xf32>
    %cst_48 = arith.constant 2.000000e+00 : f32
    %173 = vector.broadcast %cst_48 : f32 to vector<2x128xf32>
    %174 = arith.mulf %173, %172 : vector<2x128xf32>
    %cst_49 = arith.constant 1.000000e+00 : f32
    %175 = vector.broadcast %cst_49 : f32 to vector<2x128xf32>
    %176 = arith.subf %174, %175 : vector<2x128xf32>
    %177 = arith.select %15, %176, %172 : vector<2x128xi1>, vector<2x128xf32>
    %178 = vector.extract_strided_slice %177 {offsets = [0, 0], sizes = [2, 32], strides = [1, 1]} : vector<2x128xf32> to vector<2x32xf32>
    %179 = vector.extract_strided_slice %177 {offsets = [0, 32], sizes = [2, 32], strides = [1, 1]} : vector<2x128xf32> to vector<2x32xf32>
    %180 = vector.extract_strided_slice %177 {offsets = [0, 64], sizes = [2, 32], strides = [1, 1]} : vector<2x128xf32> to vector<2x32xf32>
    %181 = vector.extract_strided_slice %177 {offsets = [0, 96], sizes = [2, 32], strides = [1, 1]} : vector<2x128xf32> to vector<2x32xf32>
    %182 = arith.mulf %179, %161 : vector<2x32xf32>
    %183 = arith.mulf %178, %180 : vector<2x32xf32>
    %184 = arith.addf %182, %183 : vector<2x32xf32>
    %185 = math.tanh %184 : vector<2x32xf32>
    %186 = arith.mulf %181, %185 : vector<2x32xf32>
    %187 = vector.extract_strided_slice %23 {offsets = [7, 0, 0], sizes = [1, 2, 128], strides = [1, 1, 1]} : vector<8x2x128xf32> to vector<1x2x128xf32>
    %188 = vector.shape_cast %187 : vector<1x2x128xf32> to vector<2x128xf32>
    %cst_50 = arith.constant dense<0.000000e+00> : vector<2x128xf32>
    %189 = tpu.matmul %186, %1, %cst_50 {dimension_numbers = #tpu.dot_dimension_numbers<[1], [0], [0], [1], [0, 0, 1, 1], [], []>} : vector<2x32xf32>, vector<32x128xf32>, vector<2x128xf32> -> vector<2x128xf32>
    %190 = arith.addf %188, %189 : vector<2x128xf32>
    %191 = arith.negf %190 : vector<2x128xf32>
    %192 = math.exp %191 : vector<2x128xf32>
    %cst_51 = arith.constant 1.000000e+00 : f32
    %193 = vector.broadcast %cst_51 : f32 to vector<2x128xf32>
    %194 = arith.addf %193, %192 : vector<2x128xf32>
    %195 = arith.divf %193, %194 : vector<2x128xf32>
    %cst_52 = arith.constant 2.000000e+00 : f32
    %196 = vector.broadcast %cst_52 : f32 to vector<2x128xf32>
    %197 = arith.mulf %196, %195 : vector<2x128xf32>
    %cst_53 = arith.constant 1.000000e+00 : f32
    %198 = vector.broadcast %cst_53 : f32 to vector<2x128xf32>
    %199 = arith.subf %197, %198 : vector<2x128xf32>
    %200 = arith.select %15, %199, %195 : vector<2x128xi1>, vector<2x128xf32>
    %201 = vector.extract_strided_slice %200 {offsets = [0, 0], sizes = [2, 32], strides = [1, 1]} : vector<2x128xf32> to vector<2x32xf32>
    %202 = vector.extract_strided_slice %200 {offsets = [0, 32], sizes = [2, 32], strides = [1, 1]} : vector<2x128xf32> to vector<2x32xf32>
    %203 = vector.extract_strided_slice %200 {offsets = [0, 64], sizes = [2, 32], strides = [1, 1]} : vector<2x128xf32> to vector<2x32xf32>
    %204 = vector.extract_strided_slice %200 {offsets = [0, 96], sizes = [2, 32], strides = [1, 1]} : vector<2x128xf32> to vector<2x32xf32>
    %205 = arith.mulf %202, %184 : vector<2x32xf32>
    %206 = arith.mulf %201, %203 : vector<2x32xf32>
    %207 = arith.addf %205, %206 : vector<2x32xf32>
    %208 = math.tanh %207 : vector<2x32xf32>
    %209 = arith.mulf %204, %208 : vector<2x32xf32>
    %210 = vector.extract_strided_slice %8 {offsets = [7, 0, 0], sizes = [1, 2, 1], strides = [1, 1, 1]} : vector<8x2x1xf32> to vector<1x2x1xf32>
    %211 = vector.shape_cast %210 : vector<1x2x1xf32> to vector<2x1xf32>
    %212 = vector.broadcast %211 : vector<2x1xf32> to vector<2x128xf32>
    %213 = vector.broadcast %3 : vector<1x128xf32> to vector<2x128xf32>
    %214 = arith.mulf %212, %213 : vector<2x128xf32>
    %215 = vector.broadcast %5 : vector<1x128xf32> to vector<2x128xf32>
    %216 = arith.addf %214, %215 : vector<2x128xf32>
    %217 = vector.shape_cast %3 : vector<1x128xf32> to vector<1x1x128xf32>
    %218 = vector.broadcast %9 : vector<6x2x1xf32> to vector<6x2x128xf32>
    %219 = vector.broadcast %217 : vector<1x1x128xf32> to vector<6x2x128xf32>
    %220 = arith.mulf %218, %219 : vector<6x2x128xf32>
    %221 = vector.shape_cast %5 : vector<1x128xf32> to vector<1x1x128xf32>
    %222 = vector.broadcast %221 : vector<1x1x128xf32> to vector<6x2x128xf32>
    %223 = arith.addf %220, %222 : vector<6x2x128xf32>
    %cst_54 = arith.constant 0.000000e+00 : f32
    %224 = vector.broadcast %cst_54 : f32 to vector<2x6xf32>
    %cst_55 = arith.constant dense<0.000000e+00> : vector<2x256xf32>
    %225 = tpu.matmul %209, %4, %cst_55 {dimension_numbers = #tpu.dot_dimension_numbers<[1], [0], [0], [1], [0, 0, 1, 1], [], []>} : vector<2x32xf32>, vector<32x256xf32>, vector<2x256xf32> -> vector<2x256xf32>
    %226 = vector.extract_strided_slice %225 {offsets = [0, 0], sizes = [2, 128], strides = [1, 1]} : vector<2x256xf32> to vector<2x128xf32>
    %227 = arith.addf %216, %226 : vector<2x128xf32>
    %228 = arith.negf %227 : vector<2x128xf32>
    %229 = math.exp %228 : vector<2x128xf32>
    %cst_56 = arith.constant 1.000000e+00 : f32
    %230 = vector.broadcast %cst_56 : f32 to vector<2x128xf32>
    %231 = arith.addf %230, %229 : vector<2x128xf32>
    %232 = arith.divf %230, %231 : vector<2x128xf32>
    %cst_57 = arith.constant 2.000000e+00 : f32
    %233 = vector.broadcast %cst_57 : f32 to vector<2x128xf32>
    %234 = arith.mulf %233, %232 : vector<2x128xf32>
    %cst_58 = arith.constant 1.000000e+00 : f32
    %235 = vector.broadcast %cst_58 : f32 to vector<2x128xf32>
    %236 = arith.subf %234, %235 : vector<2x128xf32>
    %237 = arith.select %15, %236, %232 : vector<2x128xi1>, vector<2x128xf32>
    %238 = vector.extract_strided_slice %237 {offsets = [0, 0], sizes = [2, 32], strides = [1, 1]} : vector<2x128xf32> to vector<2x32xf32>
    %239 = vector.extract_strided_slice %237 {offsets = [0, 32], sizes = [2, 32], strides = [1, 1]} : vector<2x128xf32> to vector<2x32xf32>
    %240 = vector.extract_strided_slice %237 {offsets = [0, 64], sizes = [2, 32], strides = [1, 1]} : vector<2x128xf32> to vector<2x32xf32>
    %241 = vector.extract_strided_slice %237 {offsets = [0, 96], sizes = [2, 32], strides = [1, 1]} : vector<2x128xf32> to vector<2x32xf32>
    %242 = arith.mulf %239, %207 : vector<2x32xf32>
    %243 = arith.mulf %238, %240 : vector<2x32xf32>
    %244 = arith.addf %242, %243 : vector<2x32xf32>
    %245 = math.tanh %244 : vector<2x32xf32>
    %246 = arith.mulf %241, %245 : vector<2x32xf32>
    %cst_59 = arith.constant dense<0.000000e+00> : vector<2x256xf32>
    %247 = tpu.matmul %246, %4, %cst_59 {dimension_numbers = #tpu.dot_dimension_numbers<[1], [0], [0], [1], [0, 0, 1, 1], [], []>} : vector<2x32xf32>, vector<32x256xf32>, vector<2x256xf32> -> vector<2x256xf32>
    %248 = vector.extract_strided_slice %247 {offsets = [0, 128], sizes = [2, 1], strides = [1, 1]} : vector<2x256xf32> to vector<2x1xf32>
    %249 = vector.broadcast %7 : vector<1x1xf32> to vector<2x1xf32>
    %250 = arith.addf %248, %249 : vector<2x1xf32>
    %c0_i32 = arith.constant 0 : i32
    %251 = vector.broadcast %c0_i32 : i32 to vector<2x6xi32>
    %252 = arith.cmpi eq, %16, %251 : vector<2x6xi32>
    %253 = vector.shape_cast %250 : vector<2x1xf32> to vector<2x1xf32>
    %254 = vector.broadcast %253 : vector<2x1xf32> to vector<2x6xf32>
    %255 = arith.select %252, %254, %224 : vector<2x6xi1>, vector<2x6xf32>
    %256 = vector.broadcast %250 : vector<2x1xf32> to vector<2x128xf32>
    %257 = vector.broadcast %3 : vector<1x128xf32> to vector<2x128xf32>
    %258 = arith.mulf %256, %257 : vector<2x128xf32>
    %259 = vector.broadcast %5 : vector<1x128xf32> to vector<2x128xf32>
    %260 = arith.addf %258, %259 : vector<2x128xf32>
    %261 = vector.extract_strided_slice %247 {offsets = [0, 0], sizes = [2, 128], strides = [1, 1]} : vector<2x256xf32> to vector<2x128xf32>
    %262 = arith.addf %260, %261 : vector<2x128xf32>
    %263 = arith.negf %262 : vector<2x128xf32>
    %264 = math.exp %263 : vector<2x128xf32>
    %cst_60 = arith.constant 1.000000e+00 : f32
    %265 = vector.broadcast %cst_60 : f32 to vector<2x128xf32>
    %266 = arith.addf %265, %264 : vector<2x128xf32>
    %267 = arith.divf %265, %266 : vector<2x128xf32>
    %cst_61 = arith.constant 2.000000e+00 : f32
    %268 = vector.broadcast %cst_61 : f32 to vector<2x128xf32>
    %269 = arith.mulf %268, %267 : vector<2x128xf32>
    %cst_62 = arith.constant 1.000000e+00 : f32
    %270 = vector.broadcast %cst_62 : f32 to vector<2x128xf32>
    %271 = arith.subf %269, %270 : vector<2x128xf32>
    %272 = arith.select %15, %271, %267 : vector<2x128xi1>, vector<2x128xf32>
    %273 = vector.extract_strided_slice %272 {offsets = [0, 0], sizes = [2, 32], strides = [1, 1]} : vector<2x128xf32> to vector<2x32xf32>
    %274 = vector.extract_strided_slice %272 {offsets = [0, 32], sizes = [2, 32], strides = [1, 1]} : vector<2x128xf32> to vector<2x32xf32>
    %275 = vector.extract_strided_slice %272 {offsets = [0, 64], sizes = [2, 32], strides = [1, 1]} : vector<2x128xf32> to vector<2x32xf32>
    %276 = vector.extract_strided_slice %272 {offsets = [0, 96], sizes = [2, 32], strides = [1, 1]} : vector<2x128xf32> to vector<2x32xf32>
    %277 = arith.mulf %274, %244 : vector<2x32xf32>
    %278 = arith.mulf %273, %275 : vector<2x32xf32>
    %279 = arith.addf %277, %278 : vector<2x32xf32>
    %280 = math.tanh %279 : vector<2x32xf32>
    %281 = arith.mulf %276, %280 : vector<2x32xf32>
    %cst_63 = arith.constant dense<0.000000e+00> : vector<2x256xf32>
    %282 = tpu.matmul %281, %4, %cst_63 {dimension_numbers = #tpu.dot_dimension_numbers<[1], [0], [0], [1], [0, 0, 1, 1], [], []>} : vector<2x32xf32>, vector<32x256xf32>, vector<2x256xf32> -> vector<2x256xf32>
    %283 = vector.extract_strided_slice %282 {offsets = [0, 128], sizes = [2, 1], strides = [1, 1]} : vector<2x256xf32> to vector<2x1xf32>
    %284 = vector.broadcast %7 : vector<1x1xf32> to vector<2x1xf32>
    %285 = arith.addf %283, %284 : vector<2x1xf32>
    %c1_i32 = arith.constant 1 : i32
    %286 = vector.broadcast %c1_i32 : i32 to vector<2x6xi32>
    %287 = arith.cmpi eq, %16, %286 : vector<2x6xi32>
    %288 = vector.shape_cast %285 : vector<2x1xf32> to vector<2x1xf32>
    %289 = vector.broadcast %288 : vector<2x1xf32> to vector<2x6xf32>
    %290 = arith.select %287, %289, %255 : vector<2x6xi1>, vector<2x6xf32>
    %291 = vector.broadcast %285 : vector<2x1xf32> to vector<2x128xf32>
    %292 = vector.broadcast %3 : vector<1x128xf32> to vector<2x128xf32>
    %293 = arith.mulf %291, %292 : vector<2x128xf32>
    %294 = vector.broadcast %5 : vector<1x128xf32> to vector<2x128xf32>
    %295 = arith.addf %293, %294 : vector<2x128xf32>
    %296 = vector.extract_strided_slice %282 {offsets = [0, 0], sizes = [2, 128], strides = [1, 1]} : vector<2x256xf32> to vector<2x128xf32>
    %297 = arith.addf %295, %296 : vector<2x128xf32>
    %298 = arith.negf %297 : vector<2x128xf32>
    %299 = math.exp %298 : vector<2x128xf32>
    %cst_64 = arith.constant 1.000000e+00 : f32
    %300 = vector.broadcast %cst_64 : f32 to vector<2x128xf32>
    %301 = arith.addf %300, %299 : vector<2x128xf32>
    %302 = arith.divf %300, %301 : vector<2x128xf32>
    %cst_65 = arith.constant 2.000000e+00 : f32
    %303 = vector.broadcast %cst_65 : f32 to vector<2x128xf32>
    %304 = arith.mulf %303, %302 : vector<2x128xf32>
    %cst_66 = arith.constant 1.000000e+00 : f32
    %305 = vector.broadcast %cst_66 : f32 to vector<2x128xf32>
    %306 = arith.subf %304, %305 : vector<2x128xf32>
    %307 = arith.select %15, %306, %302 : vector<2x128xi1>, vector<2x128xf32>
    %308 = vector.extract_strided_slice %307 {offsets = [0, 0], sizes = [2, 32], strides = [1, 1]} : vector<2x128xf32> to vector<2x32xf32>
    %309 = vector.extract_strided_slice %307 {offsets = [0, 32], sizes = [2, 32], strides = [1, 1]} : vector<2x128xf32> to vector<2x32xf32>
    %310 = vector.extract_strided_slice %307 {offsets = [0, 64], sizes = [2, 32], strides = [1, 1]} : vector<2x128xf32> to vector<2x32xf32>
    %311 = vector.extract_strided_slice %307 {offsets = [0, 96], sizes = [2, 32], strides = [1, 1]} : vector<2x128xf32> to vector<2x32xf32>
    %312 = arith.mulf %309, %279 : vector<2x32xf32>
    %313 = arith.mulf %308, %310 : vector<2x32xf32>
    %314 = arith.addf %312, %313 : vector<2x32xf32>
    %315 = math.tanh %314 : vector<2x32xf32>
    %316 = arith.mulf %311, %315 : vector<2x32xf32>
    %cst_67 = arith.constant dense<0.000000e+00> : vector<2x256xf32>
    %317 = tpu.matmul %316, %4, %cst_67 {dimension_numbers = #tpu.dot_dimension_numbers<[1], [0], [0], [1], [0, 0, 1, 1], [], []>} : vector<2x32xf32>, vector<32x256xf32>, vector<2x256xf32> -> vector<2x256xf32>
    %318 = vector.extract_strided_slice %317 {offsets = [0, 128], sizes = [2, 1], strides = [1, 1]} : vector<2x256xf32> to vector<2x1xf32>
    %319 = vector.broadcast %7 : vector<1x1xf32> to vector<2x1xf32>
    %320 = arith.addf %318, %319 : vector<2x1xf32>
    %c2_i32 = arith.constant 2 : i32
    %321 = vector.broadcast %c2_i32 : i32 to vector<2x6xi32>
    %322 = arith.cmpi eq, %16, %321 : vector<2x6xi32>
    %323 = vector.shape_cast %320 : vector<2x1xf32> to vector<2x1xf32>
    %324 = vector.broadcast %323 : vector<2x1xf32> to vector<2x6xf32>
    %325 = arith.select %322, %324, %290 : vector<2x6xi1>, vector<2x6xf32>
    %326 = vector.extract_strided_slice %223 {offsets = [2, 0, 0], sizes = [1, 2, 128], strides = [1, 1, 1]} : vector<6x2x128xf32> to vector<1x2x128xf32>
    %327 = vector.shape_cast %326 : vector<1x2x128xf32> to vector<2x128xf32>
    %328 = vector.extract_strided_slice %317 {offsets = [0, 0], sizes = [2, 128], strides = [1, 1]} : vector<2x256xf32> to vector<2x128xf32>
    %329 = arith.addf %327, %328 : vector<2x128xf32>
    %330 = arith.negf %329 : vector<2x128xf32>
    %331 = math.exp %330 : vector<2x128xf32>
    %cst_68 = arith.constant 1.000000e+00 : f32
    %332 = vector.broadcast %cst_68 : f32 to vector<2x128xf32>
    %333 = arith.addf %332, %331 : vector<2x128xf32>
    %334 = arith.divf %332, %333 : vector<2x128xf32>
    %cst_69 = arith.constant 2.000000e+00 : f32
    %335 = vector.broadcast %cst_69 : f32 to vector<2x128xf32>
    %336 = arith.mulf %335, %334 : vector<2x128xf32>
    %cst_70 = arith.constant 1.000000e+00 : f32
    %337 = vector.broadcast %cst_70 : f32 to vector<2x128xf32>
    %338 = arith.subf %336, %337 : vector<2x128xf32>
    %339 = arith.select %15, %338, %334 : vector<2x128xi1>, vector<2x128xf32>
    %340 = vector.extract_strided_slice %339 {offsets = [0, 0], sizes = [2, 32], strides = [1, 1]} : vector<2x128xf32> to vector<2x32xf32>
    %341 = vector.extract_strided_slice %339 {offsets = [0, 32], sizes = [2, 32], strides = [1, 1]} : vector<2x128xf32> to vector<2x32xf32>
    %342 = vector.extract_strided_slice %339 {offsets = [0, 64], sizes = [2, 32], strides = [1, 1]} : vector<2x128xf32> to vector<2x32xf32>
    %343 = vector.extract_strided_slice %339 {offsets = [0, 96], sizes = [2, 32], strides = [1, 1]} : vector<2x128xf32> to vector<2x32xf32>
    %344 = arith.mulf %341, %314 : vector<2x32xf32>
    %345 = arith.mulf %340, %342 : vector<2x32xf32>
    %346 = arith.addf %344, %345 : vector<2x32xf32>
    %347 = math.tanh %346 : vector<2x32xf32>
    %348 = arith.mulf %343, %347 : vector<2x32xf32>
    %cst_71 = arith.constant dense<0.000000e+00> : vector<2x256xf32>
    %349 = tpu.matmul %348, %4, %cst_71 {dimension_numbers = #tpu.dot_dimension_numbers<[1], [0], [0], [1], [0, 0, 1, 1], [], []>} : vector<2x32xf32>, vector<32x256xf32>, vector<2x256xf32> -> vector<2x256xf32>
    %350 = vector.extract_strided_slice %349 {offsets = [0, 128], sizes = [2, 1], strides = [1, 1]} : vector<2x256xf32> to vector<2x1xf32>
    %351 = vector.broadcast %7 : vector<1x1xf32> to vector<2x1xf32>
    %352 = arith.addf %350, %351 : vector<2x1xf32>
    %c3_i32 = arith.constant 3 : i32
    %353 = vector.broadcast %c3_i32 : i32 to vector<2x6xi32>
    %354 = arith.cmpi eq, %16, %353 : vector<2x6xi32>
    %355 = vector.shape_cast %352 : vector<2x1xf32> to vector<2x1xf32>
    %356 = vector.broadcast %355 : vector<2x1xf32> to vector<2x6xf32>
    %357 = arith.select %354, %356, %325 : vector<2x6xi1>, vector<2x6xf32>
    %358 = vector.extract_strided_slice %223 {offsets = [3, 0, 0], sizes = [1, 2, 128], strides = [1, 1, 1]} : vector<6x2x128xf32> to vector<1x2x128xf32>
    %359 = vector.shape_cast %358 : vector<1x2x128xf32> to vector<2x128xf32>
    %360 = vector.extract_strided_slice %349 {offsets = [0, 0], sizes = [2, 128], strides = [1, 1]} : vector<2x256xf32> to vector<2x128xf32>
    %361 = arith.addf %359, %360 : vector<2x128xf32>
    %362 = arith.negf %361 : vector<2x128xf32>
    %363 = math.exp %362 : vector<2x128xf32>
    %cst_72 = arith.constant 1.000000e+00 : f32
    %364 = vector.broadcast %cst_72 : f32 to vector<2x128xf32>
    %365 = arith.addf %364, %363 : vector<2x128xf32>
    %366 = arith.divf %364, %365 : vector<2x128xf32>
    %cst_73 = arith.constant 2.000000e+00 : f32
    %367 = vector.broadcast %cst_73 : f32 to vector<2x128xf32>
    %368 = arith.mulf %367, %366 : vector<2x128xf32>
    %cst_74 = arith.constant 1.000000e+00 : f32
    %369 = vector.broadcast %cst_74 : f32 to vector<2x128xf32>
    %370 = arith.subf %368, %369 : vector<2x128xf32>
    %371 = arith.select %15, %370, %366 : vector<2x128xi1>, vector<2x128xf32>
    %372 = vector.extract_strided_slice %371 {offsets = [0, 0], sizes = [2, 32], strides = [1, 1]} : vector<2x128xf32> to vector<2x32xf32>
    %373 = vector.extract_strided_slice %371 {offsets = [0, 32], sizes = [2, 32], strides = [1, 1]} : vector<2x128xf32> to vector<2x32xf32>
    %374 = vector.extract_strided_slice %371 {offsets = [0, 64], sizes = [2, 32], strides = [1, 1]} : vector<2x128xf32> to vector<2x32xf32>
    %375 = vector.extract_strided_slice %371 {offsets = [0, 96], sizes = [2, 32], strides = [1, 1]} : vector<2x128xf32> to vector<2x32xf32>
    %376 = arith.mulf %373, %346 : vector<2x32xf32>
    %377 = arith.mulf %372, %374 : vector<2x32xf32>
    %378 = arith.addf %376, %377 : vector<2x32xf32>
    %379 = math.tanh %378 : vector<2x32xf32>
    %380 = arith.mulf %375, %379 : vector<2x32xf32>
    %cst_75 = arith.constant dense<0.000000e+00> : vector<2x256xf32>
    %381 = tpu.matmul %380, %4, %cst_75 {dimension_numbers = #tpu.dot_dimension_numbers<[1], [0], [0], [1], [0, 0, 1, 1], [], []>} : vector<2x32xf32>, vector<32x256xf32>, vector<2x256xf32> -> vector<2x256xf32>
    %382 = vector.extract_strided_slice %381 {offsets = [0, 128], sizes = [2, 1], strides = [1, 1]} : vector<2x256xf32> to vector<2x1xf32>
    %383 = vector.broadcast %7 : vector<1x1xf32> to vector<2x1xf32>
    %384 = arith.addf %382, %383 : vector<2x1xf32>
    %c4_i32 = arith.constant 4 : i32
    %385 = vector.broadcast %c4_i32 : i32 to vector<2x6xi32>
    %386 = arith.cmpi eq, %16, %385 : vector<2x6xi32>
    %387 = vector.shape_cast %384 : vector<2x1xf32> to vector<2x1xf32>
    %388 = vector.broadcast %387 : vector<2x1xf32> to vector<2x6xf32>
    %389 = arith.select %386, %388, %357 : vector<2x6xi1>, vector<2x6xf32>
    %390 = vector.broadcast %384 : vector<2x1xf32> to vector<2x128xf32>
    %391 = vector.broadcast %3 : vector<1x128xf32> to vector<2x128xf32>
    %392 = arith.mulf %390, %391 : vector<2x128xf32>
    %393 = vector.broadcast %5 : vector<1x128xf32> to vector<2x128xf32>
    %394 = arith.addf %392, %393 : vector<2x128xf32>
    %395 = vector.extract_strided_slice %381 {offsets = [0, 0], sizes = [2, 128], strides = [1, 1]} : vector<2x256xf32> to vector<2x128xf32>
    %396 = arith.addf %394, %395 : vector<2x128xf32>
    %397 = arith.negf %396 : vector<2x128xf32>
    %398 = math.exp %397 : vector<2x128xf32>
    %cst_76 = arith.constant 1.000000e+00 : f32
    %399 = vector.broadcast %cst_76 : f32 to vector<2x128xf32>
    %400 = arith.addf %399, %398 : vector<2x128xf32>
    %401 = arith.divf %399, %400 : vector<2x128xf32>
    %cst_77 = arith.constant 2.000000e+00 : f32
    %402 = vector.broadcast %cst_77 : f32 to vector<2x128xf32>
    %403 = arith.mulf %402, %401 : vector<2x128xf32>
    %cst_78 = arith.constant 1.000000e+00 : f32
    %404 = vector.broadcast %cst_78 : f32 to vector<2x128xf32>
    %405 = arith.subf %403, %404 : vector<2x128xf32>
    %406 = arith.select %15, %405, %401 : vector<2x128xi1>, vector<2x128xf32>
    %407 = vector.extract_strided_slice %406 {offsets = [0, 0], sizes = [2, 32], strides = [1, 1]} : vector<2x128xf32> to vector<2x32xf32>
    %408 = vector.extract_strided_slice %406 {offsets = [0, 32], sizes = [2, 32], strides = [1, 1]} : vector<2x128xf32> to vector<2x32xf32>
    %409 = vector.extract_strided_slice %406 {offsets = [0, 64], sizes = [2, 32], strides = [1, 1]} : vector<2x128xf32> to vector<2x32xf32>
    %410 = vector.extract_strided_slice %406 {offsets = [0, 96], sizes = [2, 32], strides = [1, 1]} : vector<2x128xf32> to vector<2x32xf32>
    %411 = arith.mulf %408, %378 : vector<2x32xf32>
    %412 = arith.mulf %407, %409 : vector<2x32xf32>
    %413 = arith.addf %411, %412 : vector<2x32xf32>
    %414 = math.tanh %413 : vector<2x32xf32>
    %415 = arith.mulf %410, %414 : vector<2x32xf32>
    %416 = vector.broadcast %6 : vector<1x32xf32> to vector<2x32xf32>
    %417 = arith.mulf %415, %416 : vector<2x32xf32>
    %cst_79 = arith.constant dense<0.000000e+00> : vector<2xf32>
    %418 = vector.multi_reduction <add>, %417, %cst_79 [1] : vector<2x32xf32> to vector<2xf32>
    %419 = vector.shape_cast %418 : vector<2xf32> to vector<2x1xf32>
    %420 = vector.broadcast %7 : vector<1x1xf32> to vector<2x1xf32>
    %421 = arith.addf %419, %420 : vector<2x1xf32>
    %c5_i32 = arith.constant 5 : i32
    %422 = vector.broadcast %c5_i32 : i32 to vector<2x6xi32>
    %423 = arith.cmpi eq, %16, %422 : vector<2x6xi32>
    %424 = vector.shape_cast %421 : vector<2x1xf32> to vector<2x1xf32>
    %425 = vector.broadcast %424 : vector<2x1xf32> to vector<2x6xf32>
    %426 = arith.select %423, %425, %389 : vector<2x6xi1>, vector<2x6xf32>
    %c0_80 = arith.constant 0 : index
    %c0_81 = arith.constant 0 : index
    %427 = vector.load %arg10[%c0_80, %c0_81] : memref<2x6xf32, #tpu.memory_space<vmem>>, vector<2x6xf32>
    tpu.vector_store %arg10[%c0_80, %c0_81], %426 {strides = array<i32>} : memref<2x6xf32, #tpu.memory_space<vmem>>, vector<2x6xf32>,
    return
  }
}

</mosaic_0001>

<bundles_post_ra>
// kernel: tpu_custom_call.1
= control target key start
LH: loop header
LB: loop body
LE: loop exit
PB: predicated region body
PF: predicated region fallthrough
CT: control target
= control target key end

     0   :  { %s2530_s0 = inlined_call_operand.vmem [shape: f32[8,2,1], index: 0, kind: input, shape index: {}]   ;;  %s2531_s1 = inlined_call_operand.vmem [shape: f32[6,2,1], index: 1, kind: input, shape index: {}]   ;;  %s2532_s2 = inlined_call_operand.vmem [shape: f32[1,128], index: 2, kind: input, shape index: {}]   ;;  %s2533_s3 = inlined_call_operand.vmem [shape: f32[32,128], index: 3, kind: input, shape index: {}]   ;;  %s2534_s4 = inlined_call_operand.vmem [shape: f32[1,128], index: 4, kind: input, shape index: {}]   ;;  %s2535_s5 = inlined_call_operand.vmem [shape: f32[1,128], index: 5, kind: input, shape index: {}]   ;;  %s2536_s6 = inlined_call_operand.hbm [shape: f32[32,256], index: 6, kind: input, shape index: {}]   ;;  %s2537_s7 = inlined_call_operand.vmem [shape: f32[1,128], index: 7, kind: input, shape index: {}]   ;;  %s2538_s8 = inlined_call_operand.vmem [shape: f32[1,32], index: 8, kind: input, shape index: {}]   ;;  %s2539_s9 = inlined_call_operand.<no memory space> [shape: f32[1,1], index: 9, kind: input, shape index: {}]   ;;  %s2540_s10 = inlined_call_operand.hbm [shape: f32[2,6], index: 10, kind: output, shape index: {}]  }
   0x1   :  { %v15_v0 = vstv %s2539_s9 }
   0x2   :  { %16 = vst [vmem:[#allocation2] sm:$0x1] %v15_v0 }
   0x3   :  { %17 = vsyncpa [#allocation4], 0 }
   0x4   :  { %18 = vsyncpa [#allocation5], 0  ;;  %s2123_s15 = smov [#allocation3]   ;;  %s2075_s19 = scalar_lea.hbm %s2536_s6, 1024 }
   0x5   :  { %s36_s16 = sshll.u32 %s2123_s15, 4  ;;  %p2076_p0 = scmp.ne.s32.totalorder %s2536_s6, %s2075_s19  ;;  %s37_s16 = int_to_ptr.vmem [resolvable:$true] %s36_s16 }
   0x6   :  { %p2079_p1 = scmp.lt.u32.totalorder %s2075_s19, %s2536_s6 }
   0x8   :  { %p2081_p2 = pnand %p2079_p1, %p2076_p0 }
   0xa   :  { %2084 = shalt.err (!%p2081_p2)
}
   0xb   :  { %s2085_s9 = scalar_lea.vmem %s37_s16, 1024  ;;  %p2090_p4 = scmp.lt.s32.totalorder %s37_s16, %s37_s16 }
   0xc   :  { %p2086_p3 = scmp.ne.s32.totalorder %s37_s16, %s2085_s9  ;;  %p2091_p5 = scmp.lt.s32.totalorder %s2085_s9, %s2085_s9 }
   0xe   :  { %p2092_p6 = por %p2091_p5, %p2090_p4 }
  0x10   :  { %p2093_p7 = pnand %p2092_p6, %p2086_p3 }
  0x12   :  { %2096 = shalt.err (!%p2093_p7)
}
  0x13   :  { %s2124_s24 = smov 256   ;;  %s2125_s25 = smov 16  }
  0x14   :  { %42 = dma.hbm_to_vmem [thread:$0]  %s2536_s6, 1024, %s37_s16, [#allocation4], %s2124_s24, %s2124_s24, %s2125_s25  }
  0x15   :  { %2119 = dma.done.wait [#allocation4], 1024  }
  0x16   :  { %2120 = vsyncadd [#allocation4], 4294966272  ;;  %v2126_v1 = vmov 0.0|0.0   ;;  %vm2127_vm0 = vmmov 0   ;;  %v2128_v2 = vmov 0.0   ;;  %v2129_v3 = vmov 0  }
  0x17   :  { %1882 = vmatprep.subr.bf16.mxu0 %v2126_v1  ;;  %1802 = vmatprep.mubr.msk.f32.mxu0 %vm2127_vm0, %v2128_v2  ;;  %v53_v4 = vld [vmem:[%s2533_s3] sm:$0xff]  ;;  %v54_v5 = vld [vmem:[%s2533_s3 + $0x8] sm:$0xff]  ;;  %v55_v6 = vld [vmem:[%s2533_s3 + $0x10] sm:$0xff]  ;;  %v80_v22 = vlaneseq  ;;  %vm153_vm4 = vcmask 261120   ;;  %s2132_s17 = smov 96   ;;  %vm1678_vm5 = vcmask 254976  }
  0x18   :  { %1989 = vset.pattern.permute.xlu0 %v2129_v3  ;;  %1888 = vmatprep.subr.bf16.mxu1 %v2126_v1  ;;  %v2219_v7 = vpack.c.bf16 %v54_v5, %v53_v4  ;;  %v56_v8 = vld [vmem:[%s2533_s3 + $0x18] sm:$0xff]  ;;  %v70_v9 = vld [vmem:[%s2530_s0] sm:$0x3]  ;;  %v71_v35 = vld [vmem:[%s2530_s0 + $0x2] sm:$0x3]  ;;  %vm1690_vm12 = vcmask 41984  }
  0x19   :  { %1813 = vmatprep.mubr.msk.f32.mxu1 %vm2127_vm0, %v2128_v2  ;;  %1990 = vset.pattern.permute.xlu1 %v2129_v3  ;;  %v2228_v10 = vpack.c.bf16 %v56_v8, %v55_v6  ;;  %v2247_v12 = vld [vmem:[%s2532_s2] ss:$0 sm:$0xff]  ;;  %v2256_v23 = vand.u32 127, %v80_v22  ;;  %s2130_s2 = smov 64   ;;  %v72_v58 = vld [vmem:[%s2530_s0 + $0x4] sm:$0x3] }
  0x1a   :  { %87 = vperm.xlu0 %1989, %v70_v9   ;;  %1884 = vmatpush3.bf16.msra.mxu0 %v2219_v7  ;;  %v2253_v14 = vld [vmem:[%s2534_s4] ss:$0 sm:$0xff]  ;;  %s2131_s4 = smov 32  }
  0x1b   :  { %1890 = vmatpush3.bf16.msra.mxu1 %v2219_v7  ;;  %1885 = vmatprep.subr.bf16.mxu0 %v2126_v1  ;;  %vm82_vm1 = vcmp.ge.s32.totalorder %v2256_v23, 64  ;;  %vm83_vm2 = vcmp.lt.s32.totalorder %v2256_v23, 96  ;;  %vm1181_vm6 = vcmp.eq.s32.totalorder %v2256_v23, 0  ;;  %vm1294_vm7 = vcmp.eq.s32.totalorder %v2256_v23, 1 }
  0x1c   :  { %1891 = vmatprep.subr.bf16.mxu1 %v2126_v1  ;;  %vm2260_vm3 = vmand %vm82_vm1, %vm83_vm2  ;;  %vm1407_vm8 = vcmp.eq.s32.totalorder %v2256_v23, 2  ;;  %vm1518_vm9 = vcmp.eq.s32.totalorder %v2256_v23, 3  ;;  %vm1629_vm10 = vcmp.eq.s32.totalorder %v2256_v23, 4  ;;  %vm1683_vm11 = vcmp.eq.s32.totalorder %v2256_v23, 5 }
  0x1e   :  { %1887 = vmatpush3.bf16.msra.mxu0 %v2228_v10 }
  0x1f   :  { %1893 = vmatpush3.bf16.msra.mxu1 %v2228_v10  ;;  %1894 = vmatprep.subr.bf16.mxu0 %v2126_v1 }
  0x20   :  { %1900 = vmatprep.subr.bf16.mxu1 %v2126_v1 }
  0x21   :  { %1803 = vmatmul.mubr.f32.vlgmr.msra.gmra.mrb[0].mxu0 %v2128_v2 }
  0x22   :  { %1896 = vmatpush3.bf16.msra.mxu0 %v2219_v7  ;;  %1824 = vmatprep.mubr.msk.f32.mxu0 %vm2127_vm0, %v2128_v2 }
  0x23   :  { %1897 = vmatprep.subr.bf16.mxu0 %v2126_v1 }
  0x26   :  { %1899 = vmatpush3.bf16.msra.mxu0 %v2228_v10 }
  0x27   :  { %1906 = vmatprep.subr.bf16.mxu0 %v2126_v1 }
  0x99   :  { %v88_v11 = vpop.permute.xlu0 %87 }
  0x9a   :  { %v131_v13 = vmul.f32 %v2247_v12, %v88_v11 }
  0x9c   :  { %v145_v15 = vadd.f32 %v2253_v14, %v131_v13 }
  0xf4   :  { %v223_v16 = vpop.f32.mrb[0].mxu0 }
  0xf5   :  { %v227_v17 = vadd.f32 %v223_v16, %v145_v15  ;;  %v1804_v18 = vpop.f32.mrb[1].mxu0 }
  0xf7   :  { %v1709_v19 = vmul.f32 -1.442695, %v227_v17 }
  0xf9   :  { %1991 = vpow2.f32 %v1709_v19 }
 0x103   :  { %v1992_v20 = vpop.eup %1991 }
 0x104   :  { %v231_v21 = vadd.f32 1.0, %v1992_v20 }
 0x106   :  { %1993 = vrcp.f32 %v231_v21 }
 0x110   :  { %v1994_v24 = vpop.eup %1993 }
 0x111   :  { %v234_v25 = vmul.f32 2.0, %v1994_v24 }
 0x113   :  { %v1710_v27 = vadd.f32 -1.0, %v234_v25 }
 0x115   :  { %v236_v28 = vsel %vm2260_vm3, %v1710_v27, %v1994_v24  ;;  %v73_v24 = vld [vmem:[%s2530_s0 + $0x6] sm:$0x3] }
 0x116   :  { %239 = vrot.lane.b32.xlu0 %v236_v28, %s2130_s2  ;;  %v237_v31 = vmul.f32 0.0, %v236_v28 }
 0x188   :  { %v240_v29 = vpop.permute.xlu0 %239 }
 0x189   :  { %v242_v30 = vmul.f32 %v240_v29, %v236_v28 }
 0x18b   :  { %244 = vrot.lane.b32.xlu1 %v242_v30, %s2131_s4 }
 0x1fd   :  { %v245_v32 = vpop.permute.xlu1 %244 }
 0x1fe   :  { %v247_v33 = vadd.f32 %v245_v32, %v237_v31 }
 0x200   :  { %1995 = vtanh.f32 %v247_v33 }
 0x20a   :  { %v1996_v34 = vpop.eup %1995 }
 0x20b   :  { %250 = vrot.lane.b32.xlu1 %v1996_v34, %s2130_s2 }
 0x20f   :  { %92 = vperm.xlu1 %1990, %v71_v35  }
 0x27d   :  { %v251_v36 = vpop.permute.xlu1 %250 }
 0x27e   :  { %v253_v37 = vmul.f32 %v251_v36, %v236_v28 }
 0x280   :  { %255 = vrot.lane.b32.xlu0 %v253_v37, %s2131_s4 }
 0x28e   :  { %v93_v39 = vpop.permute.xlu1 %92 }
 0x28f   :  { %v132_v40 = vmul.f32 %v2247_v12, %v93_v39 }
 0x291   :  { %v146_v41 = vadd.f32 %v2253_v14, %v132_v40 }
 0x2f2   :  { %v256_v38 = vpop.permute.xlu0 %255 }
 0x2f3   :  { %1814 = vmatmul.mubr.msk.f32.vlgmr.msra.gmra.mrb[0].mxu1 %vm153_vm4, %v256_v38 }
 0x2f4   :  { %1902 = vmatpush3.bf16.msra.mxu1 %v2219_v7  ;;  %1835 = vmatprep.mubr.msk.f32.mxu1 %vm2127_vm0, %v2128_v2 }
 0x2f5   :  { %1903 = vmatprep.subr.bf16.mxu1 %v2126_v1 }
 0x2f8   :  { %1905 = vmatpush3.bf16.msra.mxu1 %v2228_v10 }
 0x2f9   :  { %1912 = vmatprep.subr.bf16.mxu1 %v2126_v1 }
 0x3c6   :  { %v325_v42 = vpop.f32.mrb[0].mxu1 }
 0x3c7   :  { %v329_v43 = vadd.f32 %v325_v42, %v146_v41  ;;  %v1815_v44 = vpop.f32.mrb[1].mxu1 }
 0x3c9   :  { %v1712_v45 = vmul.f32 -1.442695, %v329_v43 }
 0x3cb   :  { %1997 = vpow2.f32 %v1712_v45 }
 0x3d5   :  { %v1998_v46 = vpop.eup %1997 }
 0x3d6   :  { %v333_v47 = vadd.f32 1.0, %v1998_v46 }
 0x3d8   :  { %1999 = vrcp.f32 %v333_v47 }
 0x3e2   :  { %v2000_v48 = vpop.eup %1999 }
 0x3e3   :  { %v336_v49 = vmul.f32 2.0, %v2000_v48 }
 0x3e5   :  { %v1713_v50 = vadd.f32 -1.0, %v336_v49 }
 0x3e7   :  { %v338_v51 = vsel %vm2260_vm3, %v1713_v50, %v2000_v48  ;;  %v74_v48 = vld [vmem:[%s2530_s0 + $0x8] sm:$0x3] }
 0x3e8   :  { %341 = vrot.lane.b32.xlu0 %v338_v51, %s2130_s2  ;;  %v339_v54 = vmul.f32 %v338_v51, %v247_v33 }
 0x45a   :  { %v342_v52 = vpop.permute.xlu0 %341 }
 0x45b   :  { %v344_v53 = vmul.f32 %v342_v52, %v338_v51 }
 0x45d   :  { %346 = vrot.lane.b32.xlu1 %v344_v53, %s2131_s4 }
 0x4cf   :  { %v347_v55 = vpop.permute.xlu1 %346 }
 0x4d0   :  { %v349_v56 = vadd.f32 %v347_v55, %v339_v54 }
 0x4d2   :  { %2001 = vtanh.f32 %v349_v56 }
 0x4dc   :  { %v2002_v57 = vpop.eup %2001 }
 0x4dd   :  { %352 = vrot.lane.b32.xlu0 %v2002_v57, %s2130_s2 }
 0x4e1   :  { %97 = vperm.xlu0 %1989, %v72_v58  }
 0x54f   :  { %v353_v59 = vpop.permute.xlu0 %352 }
 0x550   :  { %v355_v60 = vmul.f32 %v353_v59, %v338_v51 }
 0x552   :  { %357 = vrot.lane.b32.xlu1 %v355_v60, %s2131_s4 }
 0x560   :  { %v98_v62 = vpop.permute.xlu0 %97 }
 0x561   :  { %v133_v63 = vmul.f32 %v2247_v12, %v98_v62 }
 0x563   :  { %v147_v0 = vadd.f32 %v2253_v14, %v133_v63 }
 0x5c4   :  { %v358_v61 = vpop.permute.xlu1 %357 }
 0x5c5   :  { %1825 = vmatmul.mubr.msk.f32.vlgmr.msra.gmra.mrb[2].mxu0 %vm153_vm4, %v358_v61 }
 0x5c6   :  { %1908 = vmatpush3.bf16.msra.mxu0 %v2219_v7  ;;  %1846 = vmatprep.mubr.msk.f32.mxu0 %vm2127_vm0, %v2128_v2 }
 0x5c7   :  { %1909 = vmatprep.subr.bf16.mxu0 %v2126_v1 }
 0x5ca   :  { %1911 = vmatpush3.bf16.msra.mxu0 %v2228_v10 }
 0x5cb   :  { %1918 = vmatprep.subr.bf16.mxu0 %v2126_v1 }
 0x698   :  { %v427_v3 = vpop.f32.mrb[2].mxu0 }
 0x699   :  { %v431_v4 = vadd.f32 %v427_v3, %v147_v0  ;;  %v1826_v5 = vpop.f32.mrb[3].mxu0 }
 0x69b   :  { %v1715_v6 = vmul.f32 -1.442695, %v431_v4 }
 0x69d   :  { %2003 = vpow2.f32 %v1715_v6 }
 0x6a7   :  { %v2004_v8 = vpop.eup %2003 }
 0x6a8   :  { %v435_v9 = vadd.f32 1.0, %v2004_v8 }
 0x6aa   :  { %2005 = vrcp.f32 %v435_v9 }
 0x6b4   :  { %v2006_v11 = vpop.eup %2005 }
 0x6b5   :  { %v438_v13 = vmul.f32 2.0, %v2006_v11 }
 0x6b7   :  { %v1716_v15 = vadd.f32 -1.0, %v438_v13 }
 0x6b9   :  { %v440_v16 = vsel %vm2260_vm3, %v1716_v15, %v2006_v11  ;;  %v75_v11 = vld [vmem:[%s2530_s0 + $0xa] sm:$0x3] }
 0x6ba   :  { %443 = vrot.lane.b32.xlu1 %v440_v16, %s2130_s2  ;;  %v441_v19 = vmul.f32 %v440_v16, %v349_v56 }
 0x72c   :  { %v444_v17 = vpop.permute.xlu1 %443 }
 0x72d   :  { %v446_v18 = vmul.f32 %v444_v17, %v440_v16 }
 0x72f   :  { %448 = vrot.lane.b32.xlu0 %v446_v18, %s2131_s4 }
 0x7a1   :  { %v449_v20 = vpop.permute.xlu0 %448 }
 0x7a2   :  { %v451_v21 = vadd.f32 %v449_v20, %v441_v19 }
 0x7a4   :  { %2007 = vtanh.f32 %v451_v21 }
 0x7ae   :  { %v2008_v22 = vpop.eup %2007 }
 0x7af   :  { %454 = vrot.lane.b32.xlu1 %v2008_v22, %s2130_s2 }
 0x7b3   :  { %102 = vperm.xlu1 %1990, %v73_v24  }
 0x821   :  { %v455_v25 = vpop.permute.xlu1 %454 }
 0x822   :  { %v457_v27 = vmul.f32 %v455_v25, %v440_v16 }
 0x824   :  { %459 = vrot.lane.b32.xlu0 %v457_v27, %s2131_s4 }
 0x832   :  { %v103_v29 = vpop.permute.xlu1 %102 }
 0x833   :  { %v134_v30 = vmul.f32 %v2247_v12, %v103_v29 }
 0x835   :  { %v148_v31 = vadd.f32 %v2253_v14, %v134_v30 }
 0x896   :  { %v460_v28 = vpop.permute.xlu0 %459 }
 0x897   :  { %1836 = vmatmul.mubr.msk.f32.vlgmr.msra.gmra.mrb[2].mxu1 %vm153_vm4, %v460_v28 }
 0x898   :  { %1914 = vmatpush3.bf16.msra.mxu1 %v2219_v7  ;;  %1857 = vmatprep.mubr.msk.f32.mxu1 %vm2127_vm0, %v2128_v2 }
 0x899   :  { %1915 = vmatprep.subr.bf16.mxu1 %v2126_v1 }
 0x89c   :  { %1917 = vmatpush3.bf16.msra.mxu1 %v2228_v10 }
 0x89d   :  { %1924 = vmatprep.subr.bf16.mxu1 %v2126_v1 }
 0x96a   :  { %v529_v32 = vpop.f32.mrb[2].mxu1 }
 0x96b   :  { %v533_v33 = vadd.f32 %v529_v32, %v148_v31  ;;  %v1837_v34 = vpop.f32.mrb[3].mxu1 }
 0x96d   :  { %v1718_v35 = vmul.f32 -1.442695, %v533_v33 }
 0x96f   :  { %2009 = vpow2.f32 %v1718_v35  ;;  %v76_v35 = vld [vmem:[%s2530_s0 + $0xc] sm:$0x3] }
 0x979   :  { %v2010_v36 = vpop.eup %2009 }
 0x97a   :  { %v537_v37 = vadd.f32 1.0, %v2010_v36 }
 0x97c   :  { %2011 = vrcp.f32 %v537_v37 }
 0x986   :  { %v2012_v38 = vpop.eup %2011 }
 0x987   :  { %v540_v39 = vmul.f32 2.0, %v2012_v38 }
 0x989   :  { %v1719_v40 = vadd.f32 -1.0, %v540_v39 }
 0x98b   :  { %v542_v41 = vsel %vm2260_vm3, %v1719_v40, %v2012_v38 }
 0x98c   :  { %545 = vrot.lane.b32.xlu0 %v542_v41, %s2130_s2  ;;  %v543_v44 = vmul.f32 %v542_v41, %v451_v21 }
 0x9fe   :  { %v546_v42 = vpop.permute.xlu0 %545 }
 0x9ff   :  { %v548_v43 = vmul.f32 %v546_v42, %v542_v41 }
 0xa01   :  { %550 = vrot.lane.b32.xlu1 %v548_v43, %s2131_s4 }
 0xa73   :  { %v551_v45 = vpop.permute.xlu1 %550 }
 0xa74   :  { %v553_v46 = vadd.f32 %v551_v45, %v543_v44 }
 0xa76   :  { %2013 = vtanh.f32 %v553_v46 }
 0xa80   :  { %v2014_v47 = vpop.eup %2013 }
 0xa81   :  { %556 = vrot.lane.b32.xlu0 %v2014_v47, %s2130_s2 }
 0xa85   :  { %107 = vperm.xlu0 %1989, %v74_v48  }
 0xaf3   :  { %v557_v49 = vpop.permute.xlu0 %556 }
 0xaf4   :  { %v559_v50 = vmul.f32 %v557_v49, %v542_v41 }
 0xaf6   :  { %561 = vrot.lane.b32.xlu1 %v559_v50, %s2131_s4 }
 0xb04   :  { %v108_v52 = vpop.permute.xlu0 %107 }
 0xb05   :  { %v135_v53 = vmul.f32 %v2247_v12, %v108_v52 }
 0xb07   :  { %v149_v54 = vadd.f32 %v2253_v14, %v135_v53 }
 0xb68   :  { %v562_v51 = vpop.permute.xlu1 %561 }
 0xb69   :  { %1847 = vmatmul.mubr.msk.f32.vlgmr.msra.gmra.mrb[4].mxu0 %vm153_vm4, %v562_v51 }
 0xb6a   :  { %1920 = vmatpush3.bf16.msra.mxu0 %v2219_v7  ;;  %1868 = vmatprep.mubr.msk.f32.mxu0 %vm2127_vm0, %v2128_v2 }
 0xb6b   :  { %1921 = vmatprep.subr.bf16.mxu0 %v2126_v1 }
 0xb6e   :  { %1923 = vmatpush3.bf16.msra.mxu0 %v2228_v10 }
 0xc3c   :  { %v631_v55 = vpop.f32.mrb[4].mxu0 }
 0xc3d   :  { %v635_v56 = vadd.f32 %v631_v55, %v149_v54  ;;  %v1848_v57 = vpop.f32.mrb[5].mxu0 }
 0xc3f   :  { %v1721_v58 = vmul.f32 -1.442695, %v635_v56 }
 0xc41   :  { %2015 = vpow2.f32 %v1721_v58  ;;  %v77_v58 = vld [vmem:[%s2530_s0 + $0xe] sm:$0x3] }
 0xc4b   :  { %v2016_v59 = vpop.eup %2015 }
 0xc4c   :  { %v639_v60 = vadd.f32 1.0, %v2016_v59 }
 0xc4e   :  { %2017 = vrcp.f32 %v639_v60 }
 0xc58   :  { %v2018_v61 = vpop.eup %2017 }
 0xc59   :  { %v642_v62 = vmul.f32 2.0, %v2018_v61 }
 0xc5b   :  { %v1722_v63 = vadd.f32 -1.0, %v642_v62 }
 0xc5d   :  { %v644_v0 = vsel %vm2260_vm3, %v1722_v63, %v2018_v61 }
 0xc5e   :  { %647 = vrot.lane.b32.xlu1 %v644_v0, %s2130_s2  ;;  %v645_v5 = vmul.f32 %v644_v0, %v553_v46 }
 0xcd0   :  { %v648_v3 = vpop.permute.xlu1 %647 }
 0xcd1   :  { %v650_v4 = vmul.f32 %v648_v3, %v644_v0 }
 0xcd3   :  { %652 = vrot.lane.b32.xlu0 %v650_v4, %s2131_s4 }
 0xd45   :  { %v653_v6 = vpop.permute.xlu0 %652 }
 0xd46   :  { %v655_v8 = vadd.f32 %v653_v6, %v645_v5 }
 0xd48   :  { %2019 = vtanh.f32 %v655_v8 }
 0xd52   :  { %v2020_v9 = vpop.eup %2019 }
 0xd53   :  { %658 = vrot.lane.b32.xlu1 %v2020_v9, %s2130_s2 }
 0xd57   :  { %112 = vperm.xlu1 %1990, %v75_v11  }
 0xdc5   :  { %v659_v13 = vpop.permute.xlu1 %658 }
 0xdc6   :  { %v661_v15 = vmul.f32 %v659_v13, %v644_v0 }
 0xdc8   :  { %663 = vrot.lane.b32.xlu0 %v661_v15, %s2131_s4 }
 0xdd6   :  { %v113_v17 = vpop.permute.xlu1 %112 }
 0xdd7   :  { %v136_v18 = vmul.f32 %v2247_v12, %v113_v17 }
 0xdd9   :  { %v150_v19 = vadd.f32 %v2253_v14, %v136_v18 }
 0xe3a   :  { %v664_v16 = vpop.permute.xlu0 %663 }
 0xe3b   :  { %1858 = vmatmul.mubr.msk.f32.vlgmr.msra.gmra.mrb[4].mxu1 %vm153_vm4, %v664_v16 }
 0xe3c   :  { %1926 = vmatpush3.bf16.msra.mxu1 %v2219_v7  ;;  %1879 = vmatprep.mubr.msk.f32.mxu1 %vm2127_vm0, %v2128_v2 }
 0xe3d   :  { %1927 = vmatprep.subr.bf16.mxu1 %v2126_v1 }
 0xe40   :  { %1929 = vmatpush3.bf16.msra.mxu1 %v2228_v10 }
 0xf0e   :  { %v733_v20 = vpop.f32.mrb[4].mxu1 }
 0xf0f   :  { %v737_v21 = vadd.f32 %v733_v20, %v150_v19  ;;  %v1859_v22 = vpop.f32.mrb[5].mxu1  ;;  %v60_v20 = vld [vmem:[#allocation3 + $0x8] sm:$0xff] }
 0xf10   :  { %v59_v22 = vld [vmem:[#allocation3] sm:$0xff] }
 0xf11   :  { %v1724_v24 = vmul.f32 -1.442695, %v737_v21  ;;  %v62_v21 = vld [vmem:[#allocation3 + $0x18] sm:$0xff] }
 0xf13   :  { %2021 = vpow2.f32 %v1724_v24  ;;  %v2382_v24 = vpack.c.bf16 %v62_v21, %v60_v20 }
 0xf15   :  { %1931 = vmatprep.subr.bf16.mxu0 %v2382_v24  ;;  %1939 = vmatprep.subr.bf16.mxu1 %v2382_v24 }
 0xf1d   :  { %v2022_v25 = vpop.eup %2021 }
 0xf1e   :  { %v741_v27 = vadd.f32 1.0, %v2022_v25  ;;  %v61_v25 = vld [vmem:[#allocation3 + $0x10] sm:$0xff] }
 0xf20   :  { %2023 = vrcp.f32 %v741_v27  ;;  %v64_v27 = vld [vmem:[#allocation3 + $0x28] sm:$0xff] }
 0xf2a   :  { %v2024_v7 = vpop.eup %2023 }
 0xf2b   :  { %v744_v28 = vmul.f32 2.0, %v2024_v7 }
 0xf2d   :  { %v1725_v29 = vadd.f32 -1.0, %v744_v28  ;;  %v2384_v28 = vpack.c.bf16 %v61_v25, %v59_v22 }
 0xf2f   :  { %v746_v1 = vsel %vm2260_vm3, %v1725_v29, %v2024_v7  ;;  %v66_v7 = vld [vmem:[#allocation3 + $0x38] sm:$0xff] }
 0xf30   :  { %749 = vrot.lane.b32.xlu0 %v746_v1, %s2130_s2  ;;  %v747_v31 = vmul.f32 %v746_v1, %v655_v8  ;;  %v2386_v29 = vpack.c.bf16 %v66_v7, %v64_v27 }
 0xfa2   :  { %v750_v10 = vpop.permute.xlu0 %749 }
 0xfa3   :  { %v752_v30 = vmul.f32 %v750_v10, %v746_v1  ;;  %v65_v10 = vld [vmem:[#allocation3 + $0x30] sm:$0xff] }
 0xfa5   :  { %754 = vrot.lane.b32.xlu1 %v752_v30, %s2131_s4 }
0x1017   :  { %v755_v32 = vpop.permute.xlu1 %754 }
0x1018   :  { %v757_v33 = vadd.f32 %v755_v32, %v747_v31 }
0x101a   :  { %2025 = vtanh.f32 %v757_v33 }
0x1024   :  { %v2026_v34 = vpop.eup %2025 }
0x1025   :  { %760 = vrot.lane.b32.xlu0 %v2026_v34, %s2130_s2 }
0x1029   :  { %117 = vperm.xlu0 %1989, %v76_v35   ;;  %v2411_v35 = vld [vmem:[%s2535_s5] ss:$0 sm:$0xff] }
0x1097   :  { %v761_v36 = vpop.permute.xlu0 %760 }
0x1098   :  { %v763_v37 = vmul.f32 %v761_v36, %v746_v1  ;;  %v63_v1 = vld [vmem:[#allocation3 + $0x20] sm:$0xff] }
0x1099   :  { %v2391_v30 = vpack.c.bf16 %v65_v10, %v63_v1 }
0x109a   :  { %765 = vrot.lane.b32.xlu1 %v763_v37, %s2131_s4  ;;  %v2417_v37 = vld [vmem:[%s2537_s7] ss:$0 sm:$0xff] }
0x10a8   :  { %v118_v39 = vpop.permute.xlu0 %117 }
0x10a9   :  { %v137_v40 = vmul.f32 %v2247_v12, %v118_v39 }
0x10ab   :  { %v151_v41 = vadd.f32 %v2253_v14, %v137_v40 }
0x110c   :  { %v766_v38 = vpop.permute.xlu1 %765 }
0x110d   :  { %1869 = vmatmul.mubr.msk.f32.vlgmr.msra.gmra.mrb[6].mxu0 %vm153_vm4, %v766_v38 }
0x110e   :  { %1065 = vmatprep.mubr.f32.mxu0 %v2128_v2  ;;  %1933 = vmatpush1.bf16.msra.mxu0 %v2384_v28 }
0x110f   :  { %1935 = vmatprep.subr.bf16.mxu0 %v2386_v29 }
0x1112   :  { %1937 = vmatpush1.bf16.msra.mxu0 %v2391_v30 }
0x1113   :  { %1947 = vmatprep.subr.bf16.mxu0 %v2382_v24 }
0x11e0   :  { %v835_v42 = vpop.f32.mrb[6].mxu0 }
0x11e1   :  { %v839_v43 = vadd.f32 %v835_v42, %v151_v41  ;;  %v1870_v44 = vpop.f32.mrb[7].mxu0 }
0x11e3   :  { %v1727_v45 = vmul.f32 -1.442695, %v839_v43 }
0x11e5   :  { %2027 = vpow2.f32 %v1727_v45 }
0x11ef   :  { %v2028_v46 = vpop.eup %2027 }
0x11f0   :  { %v843_v47 = vadd.f32 1.0, %v2028_v46 }
0x11f2   :  { %2029 = vrcp.f32 %v843_v47 }
0x11fc   :  { %v2030_v48 = vpop.eup %2029 }
0x11fd   :  { %v846_v49 = vmul.f32 2.0, %v2030_v48 }
0x11ff   :  { %v1728_v50 = vadd.f32 -1.0, %v846_v49 }
0x1201   :  { %v848_v51 = vsel %vm2260_vm3, %v1728_v50, %v2030_v48 }
0x1202   :  { %851 = vrot.lane.b32.xlu1 %v848_v51, %s2130_s2  ;;  %v849_v54 = vmul.f32 %v848_v51, %v757_v33 }
0x1274   :  { %v852_v52 = vpop.permute.xlu1 %851 }
0x1275   :  { %v854_v53 = vmul.f32 %v852_v52, %v848_v51 }
0x1277   :  { %856 = vrot.lane.b32.xlu0 %v854_v53, %s2131_s4 }
0x12e9   :  { %v857_v55 = vpop.permute.xlu0 %856 }
0x12ea   :  { %v859_v56 = vadd.f32 %v857_v55, %v849_v54 }
0x12ec   :  { %2031 = vtanh.f32 %v859_v56 }
0x12f6   :  { %v2032_v57 = vpop.eup %2031 }
0x12f7   :  { %862 = vrot.lane.b32.xlu1 %v2032_v57, %s2130_s2 }
0x12fb   :  { %122 = vperm.xlu1 %1990, %v77_v58   ;;  %v2432_v58 = vld [vmem:[#allocation2] ss:$0 sm:$0xff] }
0x1369   :  { %v863_v59 = vpop.permute.xlu1 %862 }
0x136a   :  { %v865_v60 = vmul.f32 %v863_v59, %v848_v51 }
0x136c   :  { %867 = vrot.lane.b32.xlu0 %v865_v60, %s2131_s4 }
0x137a   :  { %v123_v62 = vpop.permute.xlu1 %122 }
0x137b   :  { %v138_v63 = vmul.f32 %v2247_v12, %v123_v62  ;;  %v974_v36 = vmul.f32 %v2411_v35, %v123_v62 }
0x137d   :  { %v152_v0 = vadd.f32 %v2253_v14, %v138_v63  ;;  %v981_v38 = vadd.f32 %v2417_v37, %v974_v36 }
0x13de   :  { %v868_v61 = vpop.permute.xlu0 %867 }
0x13df   :  { %1880 = vmatmul.mubr.msk.f32.vlgmr.msra.gmra.mrb[6].mxu1 %vm153_vm4, %v868_v61 }
0x13e0   :  { %1167 = vmatprep.mubr.f32.mxu1 %v2128_v2  ;;  %1941 = vmatpush1.bf16.msra.mxu1 %v2384_v28 }
0x13e1   :  { %1943 = vmatprep.subr.bf16.mxu1 %v2386_v29 }
0x13e4   :  { %1945 = vmatpush1.bf16.msra.mxu1 %v2391_v30 }
0x13e5   :  { %1955 = vmatprep.subr.bf16.mxu1 %v2382_v24 }
0x14b2   :  { %v937_v3 = vpop.f32.mrb[6].mxu1 }
0x14b3   :  { %v941_v4 = vadd.f32 %v937_v3, %v152_v0  ;;  %v1881_v5 = vpop.f32.mrb[7].mxu1 }
0x14b5   :  { %v1730_v6 = vmul.f32 -1.442695, %v941_v4 }
0x14b7   :  { %2033 = vpow2.f32 %v1730_v6 }
0x14c1   :  { %v2034_v8 = vpop.eup %2033 }
0x14c2   :  { %v945_v9 = vadd.f32 1.0, %v2034_v8 }
0x14c4   :  { %2035 = vrcp.f32 %v945_v9 }
0x14ce   :  { %v2036_v11 = vpop.eup %2035 }
0x14cf   :  { %v948_v13 = vmul.f32 2.0, %v2036_v11 }
0x14d1   :  { %v1731_v15 = vadd.f32 -1.0, %v948_v13 }
0x14d3   :  { %v950_v16 = vsel %vm2260_vm3, %v1731_v15, %v2036_v11 }
0x14d4   :  { %953 = vrot.lane.b32.xlu0 %v950_v16, %s2130_s2  ;;  %v951_v14 = vmul.f32 %v950_v16, %v859_v56 }
0x1546   :  { %v954_v17 = vpop.permute.xlu0 %953 }
0x1547   :  { %v956_v12 = vmul.f32 %v954_v17, %v950_v16 }
0x1549   :  { %958 = vrot.lane.b32.xlu1 %v956_v12, %s2131_s4 }
0x15bb   :  { %v959_v18 = vpop.permute.xlu1 %958 }
0x15bc   :  { %v961_v19 = vadd.f32 %v959_v18, %v951_v14 }
0x15be   :  { %2037 = vtanh.f32 %v961_v19 }
0x15c8   :  { %v2038_v31 = vpop.eup %2037 }
0x15c9   :  { %964 = vrot.lane.b32.xlu0 %v2038_v31, %s2130_s2 }
0x163b   :  { %v965_v32 = vpop.permute.xlu0 %964 }
0x163c   :  { %v967_v33 = vmul.f32 %v965_v32, %v950_v16 }
0x163e   :  { %997 = vrot.lane.b32.xlu1 %v967_v33, %s2131_s4 }
0x16b0   :  { %v998_v34 = vpop.permute.xlu1 %997 }
0x16b1   :  { %1734 = vmatmul.mubr.msk.f32.vlgmr.msra.gmra.mrb[8].mxu0 %vm153_vm4, %v998_v34 }
0x16b2   :  { %1949 = vmatpush1.bf16.msra.mxu0 %v2384_v28  ;;  %1286 = vmatprep.mubr.f32.mxu0 %v2128_v2 }
0x16b3   :  { %1951 = vmatprep.subr.bf16.mxu0 %v2386_v29 }
0x16b6   :  { %1953 = vmatpush1.bf16.msra.mxu0 %v2391_v30 }
0x16b7   :  { %1963 = vmatprep.subr.bf16.mxu0 %v2382_v24 }
0x1784   :  { %v1067_v39 = vpop.f32.mrb[8].mxu0 }
0x1785   :  { %v1071_v40 = vadd.f32 %v1067_v39, %v981_v38  ;;  %v1069_v41 = vpop.f32.mrb[9].mxu0 }
0x1787   :  { %v1735_v42 = vmul.f32 -1.442695, %v1071_v40 }
0x1789   :  { %2039 = vpow2.f32 %v1735_v42 }
0x1793   :  { %v2040_v43 = vpop.eup %2039 }
0x1794   :  { %v1075_v44 = vadd.f32 1.0, %v2040_v43 }
0x1796   :  { %2041 = vrcp.f32 %v1075_v44 }
0x17a0   :  { %v2042_v45 = vpop.eup %2041 }
0x17a1   :  { %v1078_v46 = vmul.f32 2.0, %v2042_v45 }
0x17a3   :  { %v1736_v47 = vadd.f32 -1.0, %v1078_v46  ;;  %v78_v46 = vld [vmem:[%s2531_s1 + $0x4] sm:$0x3] }
0x17a5   :  { %v1080_v48 = vsel %vm2260_vm3, %v1736_v47, %v2042_v45 }
0x17a6   :  { %1083 = vrot.lane.b32.xlu0 %v1080_v48, %s2130_s2  ;;  %v1081_v51 = vmul.f32 %v1080_v48, %v961_v19 }
0x1818   :  { %v1084_v49 = vpop.permute.xlu0 %1083 }
0x1819   :  { %v1086_v50 = vmul.f32 %v1084_v49, %v1080_v48 }
0x181b   :  { %1088 = vrot.lane.b32.xlu1 %v1086_v50, %s2131_s4 }
0x188d   :  { %v1089_v52 = vpop.permute.xlu1 %1088 }
0x188e   :  { %v1091_v53 = vadd.f32 %v1089_v52, %v1081_v51 }
0x1890   :  { %2043 = vtanh.f32 %v1091_v53 }
0x189a   :  { %v2044_v54 = vpop.eup %2043 }
0x189b   :  { %1094 = vrot.lane.b32.xlu0 %v2044_v54, %s2130_s2 }
0x190d   :  { %v1095_v55 = vpop.permute.xlu0 %1094 }
0x190e   :  { %v1097_v56 = vmul.f32 %v1095_v55, %v1080_v48 }
0x1910   :  { %1099 = vrot.lane.b32.xlu1 %v1097_v56, %s2131_s4 }
0x1982   :  { %v1100_v57 = vpop.permute.xlu1 %1099 }
0x1983   :  { %1737 = vmatmul.mubr.msk.f32.vlgmr.msra.gmra.mrb[8].mxu1 %vm153_vm4, %v1100_v57 }
0x1984   :  { %1957 = vmatpush1.bf16.msra.mxu1 %v2384_v28  ;;  %1399 = vmatprep.mubr.f32.mxu1 %v2128_v2 }
0x1985   :  { %1959 = vmatprep.subr.bf16.mxu1 %v2386_v29 }
0x1988   :  { %1961 = vmatpush1.bf16.msra.mxu1 %v2391_v30 }
0x1989   :  { %1971 = vmatprep.subr.bf16.mxu1 %v2382_v24 }
0x1a56   :  { %v1169_v59 = vpop.f32.mrb[8].mxu1 }
0x1a57   :  { %v1171_v60 = vpop.f32.mrb[9].mxu1 }
0x1a58   :  { %v1180_v61 = vadd.f32 %v2432_v58, %v1171_v60 }
0x1a5a   :  { %1184 = vperm.xlu0 %1989, %v1180_v61  }
0x1ad9   :  { %v2435_v62 = vpop.permute.xlu0 %1184 }
0x1ada   :  { %v1188_v63 = vmul.f32 %v2411_v35, %v2435_v62 }
0x1adc   :  { %v1189_v0 = vadd.f32 %v2417_v37, %v1188_v63 }
0x1ade   :  { %v1190_v3 = vadd.f32 %v1189_v0, %v1169_v59 }
0x1ae0   :  { %v1739_v4 = vmul.f32 -1.442695, %v1190_v3 }
0x1ae2   :  { %2045 = vpow2.f32 %v1739_v4 }
0x1aec   :  { %v2046_v5 = vpop.eup %2045 }
0x1aed   :  { %v1194_v6 = vadd.f32 1.0, %v2046_v5  ;;  %v79_v5 = vld [vmem:[%s2531_s1 + $0x6] sm:$0x3] }
0x1aef   :  { %2047 = vrcp.f32 %v1194_v6 }
0x1af9   :  { %v2048_v8 = vpop.eup %2047 }
0x1afa   :  { %v1197_v9 = vmul.f32 2.0, %v2048_v8 }
0x1afc   :  { %v1740_v11 = vadd.f32 -1.0, %v1197_v9 }
0x1afe   :  { %v1199_v13 = vsel %vm2260_vm3, %v1740_v11, %v2048_v8 }
0x1aff   :  { %1202 = vrot.lane.b32.xlu1 %v1199_v13, %s2130_s2  ;;  %v1200_v17 = vmul.f32 %v1199_v13, %v1091_v53 }
0x1b71   :  { %v1203_v15 = vpop.permute.xlu1 %1202 }
0x1b72   :  { %v1205_v16 = vmul.f32 %v1203_v15, %v1199_v13 }
0x1b74   :  { %1207 = vrot.lane.b32.xlu0 %v1205_v16, %s2131_s4 }
0x1be6   :  { %v1208_v12 = vpop.permute.xlu0 %1207 }
0x1be7   :  { %v1210_v14 = vadd.f32 %v1208_v12, %v1200_v17 }
0x1be9   :  { %2049 = vtanh.f32 %v1210_v14 }
0x1bf3   :  { %v2050_v18 = vpop.eup %2049 }
0x1bf4   :  { %1213 = vrot.lane.b32.xlu1 %v2050_v18, %s2130_s2 }
0x1c66   :  { %v1214_v19 = vpop.permute.xlu1 %1213 }
0x1c67   :  { %v1216_v20 = vmul.f32 %v1214_v19, %v1199_v13 }
0x1c69   :  { %1218 = vrot.lane.b32.xlu0 %v1216_v20, %s2131_s4 }
0x1cdb   :  { %v1219_v21 = vpop.permute.xlu0 %1218 }
0x1cdc   :  { %1741 = vmatmul.mubr.msk.f32.vlgmr.msra.gmra.mrb[10].mxu0 %vm153_vm4, %v1219_v21 }
0x1cdd   :  { %1965 = vmatpush1.bf16.msra.mxu0 %v2384_v28  ;;  %1510 = vmatprep.mubr.f32.mxu0 %v2128_v2 }
0x1cde   :  { %1967 = vmatprep.subr.bf16.mxu0 %v2386_v29 }
0x1ce1   :  { %1969 = vmatpush1.bf16.msra.mxu0 %v2391_v30 }
0x1daf   :  { %v1288_v22 = vpop.f32.mrb[10].mxu0 }
0x1db0   :  { %v1290_v24 = vpop.f32.mrb[11].mxu0 }
0x1db1   :  { %v1293_v25 = vadd.f32 %v2432_v58, %v1290_v24 }
0x1db3   :  { %1297 = vperm.xlu1 %1990, %v1293_v25  }
0x1e32   :  { %v2452_v27 = vpop.permute.xlu1 %1297 }
0x1e33   :  { %v1301_v7 = vmul.f32 %v2411_v35, %v2452_v27 }
0x1e35   :  { %v1302_v1 = vadd.f32 %v2417_v37, %v1301_v7 }
0x1e37   :  { %v1303_v10 = vadd.f32 %v1302_v1, %v1288_v22 }
0x1e39   :  { %v1742_v31 = vmul.f32 -1.442695, %v1303_v10 }
0x1e3b   :  { %2051 = vpow2.f32 %v1742_v31 }
0x1e45   :  { %v2052_v32 = vpop.eup %2051 }
0x1e46   :  { %v1307_v33 = vadd.f32 1.0, %v2052_v32 }
0x1e48   :  { %2053 = vrcp.f32 %v1307_v33 }
0x1e52   :  { %v2054_v34 = vpop.eup %2053 }
0x1e53   :  { %v1310_v36 = vmul.f32 2.0, %v2054_v34 }
0x1e55   :  { %v1743_v38 = vadd.f32 -1.0, %v1310_v36 }
0x1e57   :  { %v1312_v39 = vsel %vm2260_vm3, %v1743_v38, %v2054_v34 }
0x1e58   :  { %1315 = vrot.lane.b32.xlu0 %v1312_v39, %s2130_s2  ;;  %v1313_v42 = vmul.f32 %v1312_v39, %v1210_v14 }
0x1eca   :  { %v1316_v40 = vpop.permute.xlu0 %1315 }
0x1ecb   :  { %v1318_v41 = vmul.f32 %v1316_v40, %v1312_v39 }
0x1ecd   :  { %1320 = vrot.lane.b32.xlu1 %v1318_v41, %s2131_s4 }
0x1f3f   :  { %v1321_v43 = vpop.permute.xlu1 %1320 }
0x1f40   :  { %v1323_v44 = vadd.f32 %v1321_v43, %v1313_v42 }
0x1f42   :  { %2055 = vtanh.f32 %v1323_v44 }
0x1f4c   :  { %v2056_v45 = vpop.eup %2055 }
0x1f4d   :  { %1326 = vrot.lane.b32.xlu0 %v2056_v45, %s2130_s2 }
0x1f51   :  { %984 = vperm.xlu0 %1989, %v78_v46  }
0x1fbf   :  { %v1327_v47 = vpop.permute.xlu0 %1326 }
0x1fc0   :  { %v1329_v48 = vmul.f32 %v1327_v47, %v1312_v39 }
0x1fc2   :  { %1331 = vrot.lane.b32.xlu1 %v1329_v48, %s2131_s4 }
0x1fd0   :  { %v985_v50 = vpop.permute.xlu0 %984 }
0x1fd1   :  { %v992_v51 = vmul.f32 %v2411_v35, %v985_v50 }
0x1fd3   :  { %v994_v52 = vadd.f32 %v2417_v37, %v992_v51 }
0x2034   :  { %v1332_v49 = vpop.permute.xlu1 %1331 }
0x2035   :  { %1744 = vmatmul.mubr.msk.f32.vlgmr.msra.gmra.mrb[10].mxu1 %vm153_vm4, %v1332_v49 }
0x2036   :  { %1973 = vmatpush1.bf16.msra.mxu1 %v2384_v28  ;;  %1621 = vmatprep.mubr.f32.mxu1 %v2128_v2 }
0x2037   :  { %1975 = vmatprep.subr.bf16.mxu1 %v2386_v29 }
0x203a   :  { %1977 = vmatpush1.bf16.msra.mxu1 %v2391_v30 }
0x2108   :  { %v1401_v53 = vpop.f32.mrb[10].mxu1 }
0x2109   :  { %v1414_v54 = vadd.f32 %v1401_v53, %v994_v52  ;;  %v2473_v55 = vpop.f32.mrb[11].mxu1 }
0x210b   :  { %v1745_v56 = vmul.f32 -1.442695, %v1414_v54 }
0x210d   :  { %2057 = vpow2.f32 %v1745_v56 }
0x2117   :  { %v2058_v57 = vpop.eup %2057 }
0x2118   :  { %v1418_v59 = vadd.f32 1.0, %v2058_v57 }
0x211a   :  { %2059 = vrcp.f32 %v1418_v59 }
0x2124   :  { %v2060_v28 = vpop.eup %2059 }
0x2125   :  { %v1421_v2 = vmul.f32 2.0, %v2060_v28 }
0x2127   :  { %v1746_v60 = vadd.f32 -1.0, %v1421_v2 }
0x2129   :  { %v1423_v29 = vsel %vm2260_vm3, %v1746_v60, %v2060_v28  ;;  %v1406_v60 = vadd.f32 %v2432_v58, %v2473_v55  ;;  %v1187_v55 = vsel %vm1181_vm6, %v2435_v62, 0.0 }
0x212a   :  { %1426 = vrot.lane.b32.xlu1 %v1423_v29, %s2130_s2  ;;  %v1424_v63 = vmul.f32 %v1423_v29, %v1323_v44 }
0x219c   :  { %v1427_v30 = vpop.permute.xlu1 %1426 }
0x219d   :  { %v1429_v61 = vmul.f32 %v1427_v30, %v1423_v29 }
0x219f   :  { %1431 = vrot.lane.b32.xlu0 %v1429_v61, %s2131_s4 }
0x2211   :  { %v1432_v0 = vpop.permute.xlu0 %1431 }
0x2212   :  { %v1434_v3 = vadd.f32 %v1432_v0, %v1424_v63 }
0x2214   :  { %2061 = vtanh.f32 %v1434_v3 }
0x221e   :  { %v2062_v4 = vpop.eup %2061 }
0x221f   :  { %1437 = vrot.lane.b32.xlu1 %v2062_v4, %s2130_s2 }
0x2223   :  { %989 = vperm.xlu1 %1990, %v79_v5   ;;  %v1300_v5 = vsel %vm1294_vm7, %v2452_v27, %v1187_v55 }
0x2291   :  { %v1438_v6 = vpop.permute.xlu1 %1437 }
0x2292   :  { %v1440_v8 = vmul.f32 %v1438_v6, %v1423_v29 }
0x2294   :  { %1442 = vrot.lane.b32.xlu0 %v1440_v8, %s2131_s4 }
0x22a2   :  { %v990_v11 = vpop.permute.xlu1 %989 }
0x22a3   :  { %v993_v13 = vmul.f32 %v2411_v35, %v990_v11 }
0x22a5   :  { %v995_v15 = vadd.f32 %v2417_v37, %v993_v13 }
0x2306   :  { %v1443_v9 = vpop.permute.xlu0 %1442 }
0x2307   :  { %1747 = vmatmul.mubr.msk.f32.vlgmr.msra.gmra.mrb[12].mxu0 %vm153_vm4, %v1443_v9 }
0x23da   :  { %v1512_v16 = vpop.f32.mrb[12].mxu0 }
0x23db   :  { %v1525_v17 = vadd.f32 %v1512_v16, %v995_v15  ;;  %v1514_v12 = vpop.f32.mrb[13].mxu0 }
0x23dc   :  { %v1517_v29 = vadd.f32 %v2432_v58, %v1514_v12 }
0x23dd   :  { %v1748_v14 = vmul.f32 -1.442695, %v1525_v17 }
0x23df   :  { %2063 = vpow2.f32 %v1748_v14 }
0x23e9   :  { %v2064_v18 = vpop.eup %2063 }
0x23ea   :  { %v1529_v19 = vadd.f32 1.0, %v2064_v18 }
0x23ec   :  { %2065 = vrcp.f32 %v1529_v19 }
0x23f6   :  { %v2066_v20 = vpop.eup %2065 }
0x23f7   :  { %v1532_v21 = vmul.f32 2.0, %v2066_v20 }
0x23f9   :  { %v1749_v22 = vadd.f32 -1.0, %v1532_v21 }
0x23fb   :  { %v1534_v24 = vsel %vm2260_vm3, %v1749_v22, %v2066_v20 }
0x23fc   :  { %1537 = vrot.lane.b32.xlu0 %v1534_v24, %s2130_s2  ;;  %v1535_v1 = vmul.f32 %v1534_v24, %v1434_v3 }
0x246e   :  { %v1538_v25 = vpop.permute.xlu0 %1537 }
0x246f   :  { %v1540_v7 = vmul.f32 %v1538_v25, %v1534_v24 }
0x2471   :  { %1542 = vrot.lane.b32.xlu1 %v1540_v7, %s2131_s4 }
0x24e3   :  { %v1543_v10 = vpop.permute.xlu1 %1542 }
0x24e4   :  { %v1545_v31 = vadd.f32 %v1543_v10, %v1535_v1 }
0x24e6   :  { %2067 = vtanh.f32 %v1545_v31 }
0x24f0   :  { %v2068_v32 = vpop.eup %2067 }
0x24f1   :  { %1548 = vrot.lane.b32.xlu0 %v2068_v32, %s2130_s2 }
0x2563   :  { %v1549_v33 = vpop.permute.xlu0 %1548 }
0x2564   :  { %v1551_v34 = vmul.f32 %v1549_v33, %v1534_v24 }
0x2566   :  { %1553 = vrot.lane.b32.xlu1 %v1551_v34, %s2131_s4 }
0x25d8   :  { %v1554_v36 = vpop.permute.xlu1 %1553 }
0x25d9   :  { %1750 = vmatmul.mubr.msk.f32.vlgmr.msra.gmra.mrb[12].mxu1 %vm153_vm4, %v1554_v36 }
0x26ac   :  { %v1623_v38 = vpop.f32.mrb[12].mxu1 }
0x26ad   :  { %v1625_v39 = vpop.f32.mrb[13].mxu1 }
0x26ae   :  { %v1628_v40 = vadd.f32 %v2432_v58, %v1625_v39 }
0x26b0   :  { %1632 = vperm.xlu0 %1989, %v1628_v40  }
0x272f   :  { %v1633_v41 = vpop.permute.xlu0 %1632 }
0x2730   :  { %v1636_v42 = vmul.f32 %v2411_v35, %v1633_v41  ;;  %v1753_v35 = vld [vmem:[%s2538_s8] ss:$0 sm:$0xff]  ;;  %s2133_s8 = smov [#allocation6]  }
0x2731   :  { %s1698_s18 = sshll.u32 %s2133_s8, 4  ;;  %s1699_s18 = int_to_ptr.vmem [resolvable:$true] %s1698_s18 }
0x2732   :  { %v1637_v43 = vadd.f32 %v2417_v37, %v1636_v42  ;;  %s2097_s19 = scalar_lea.vmem %s1699_s18, 32  ;;  %p2102_p9 = scmp.lt.s32.totalorder %s1699_s18, %s1699_s18 }
0x2733   :  { %p2098_p8 = scmp.ne.s32.totalorder %s1699_s18, %s2097_s19  ;;  %p2103_p10 = scmp.lt.s32.totalorder %s2097_s19, %s2097_s19 }
0x2734   :  { %v1638_v44 = vadd.f32 %v1637_v43, %v1623_v38 }
0x2735   :  { %p2104_p11 = por %p2103_p10, %p2102_p9 }
0x2736   :  { %v1751_v45 = vmul.f32 -1.442695, %v1638_v44 }
0x2737   :  { %p2105_p12 = pnand %p2104_p11, %p2098_p8 }
0x2738   :  { %2069 = vpow2.f32 %v1751_v45 }
0x2742   :  { %v2070_v46 = vpop.eup %2069 }
0x2743   :  { %v1642_v47 = vadd.f32 1.0, %v2070_v46 }
0x2745   :  { %2071 = vrcp.f32 %v1642_v47 }
0x274f   :  { %v2072_v48 = vpop.eup %2071 }
0x2750   :  { %v1645_v49 = vmul.f32 2.0, %v2072_v48 }
0x2752   :  { %v1752_v50 = vadd.f32 -1.0, %v1645_v49 }
0x2754   :  { %v1647_v51 = vsel %vm2260_vm3, %v1752_v50, %v2072_v48 }
0x2755   :  { %1650 = vrot.lane.b32.xlu1 %v1647_v51, %s2130_s2  ;;  %v1648_v37 = vmul.f32 %v1647_v51, %v1545_v31 }
0x27c7   :  { %v1651_v52 = vpop.permute.xlu1 %1650 }
0x27c8   :  { %v1653_v53 = vmul.f32 %v1651_v52, %v1647_v51 }
0x27ca   :  { %1655 = vrot.lane.b32.xlu0 %v1653_v53, %s2131_s4 }
0x27ce   :  { %1670 = vrot.lane.b32.xlu0 %v1753_v35, %s2132_s17 }
0x283c   :  { %v1656_v54 = vpop.permute.xlu0 %1655 }
0x283d   :  { %v1658_v56 = vadd.f32 %v1656_v54, %v1648_v37 }
0x283f   :  { %2073 = vtanh.f32 %v1658_v56 }
0x2840   :  { %v1671_v59 = vpop.permute.xlu0 %1670 }
0x2849   :  { %v2074_v57 = vpop.eup %2073 }
0x284a   :  { %1661 = vrot.lane.b32.xlu1 %v2074_v57, %s2130_s2 }
0x28bc   :  { %v1662_v26 = vpop.permute.xlu1 %1661 }
0x28bd   :  { %v1664_v28 = vmul.f32 %v1662_v26, %v1647_v51 }
0x28bf   :  { %v1673_v2 = vmul.f32 %v1671_v59, %v1664_v28 }
0x28c1   :  { %1675 = vrot.lane.b32.xlu1 %v1673_v2, %s2131_s4 }
0x28c5   :  { %1410 = vperm.xlu1 %1990, %v1406_v60  }
0x28c9   :  { %1521 = vperm.xlu1 %1990, %v1517_v29  }
0x2933   :  { %v1676_v30 = vpop.permute.xlu1 %1675 }
0x2934   :  { %v1679_v61 = vsel %vm1678_vm5, %v1676_v30, 0.0 }
0x2935   :  { %1680 = vadd.xlane.f32.xlu0 %v1679_v61 }
0x2944   :  { %v1411_v3 = vpop.permute.xlu1 %1410 }
0x2945   :  { %v1413_v6 = vsel %vm1407_vm8, %v1411_v3, %v1300_v5 }
0x2948   :  { %v1522_v4 = vpop.permute.xlu1 %1521 }
0x2949   :  { %v1524_v8 = vsel %vm1518_vm9, %v1522_v4, %v1413_v6 }
0x294a   :  { %v1635_v9 = vsel %vm1629_vm10, %v1633_v41, %v1524_v8 }
0x29c2   :  { %v1681_v63 = vpop.xlane.xlu0 %1680 }
0x29c3   :  { %v1682_v0 = vadd.f32 %v2432_v58, %v1681_v63 }
0x29c5   :  { %1686 = vperm.xlu1 %1990, %v1682_v0  }
0x2a44   :  { %v1687_v58 = vpop.permute.xlu1 %1686 }
0x2a45   :  { %v1689_v11 = vsel %vm1683_vm11, %v1687_v58, %v1635_v9 }
0x2a46   :  { %1691 = vst.msk [vmem:[#allocation6] sm:$0x3] %vm1690_vm12, %v1689_v11 }
0x2a47   :  { %2108 = shalt.err (!%p2105_p12)
}
0x2a48   :  { %s2109_s20 = scalar_lea.hbm %s2540_s10, 32 }
0x2a49   :  { %p2110_p13 = scmp.ne.s32.totalorder %s2540_s10, %s2109_s20  ;;  %p2113_p0 = scmp.lt.u32.totalorder %s2109_s20, %s2540_s10 }
0x2a4b   :  { %p2115_p1 = pnand %p2113_p0, %p2110_p13 }
0x2a4d   :  { %2118 = shalt.err (!%p2115_p1)
}
0x2a4e   :  { %1701 = dma.vmem_to_hbm [thread:$0]  %s1699_s18, 32, %s2540_s10, [#allocation5]  }
0x2a4f   :  { %2121 = dma.done.wait [#allocation5], 32  }
0x2a50   :  { %2122 = vsyncadd [#allocation5], 4294967264 }
0x2a51   :  { %1705 = vsyncpa [#allocation4], 1 }
0x2a52   :  { %1706 = vsyncpa [#allocation5], 1 }

</bundles_post_ra>
